<compile_context>
chip_gen: v5e
topology: v5e:2x2
jax: 0.10.0
libtpu: 0.0.40
codegen_flags: <defaults>
</compile_context>

<pallas_src>
import functools

import jax
import jax.numpy as jnp
from jax.experimental import pallas as pl
from jax.experimental.pallas import tpu as pltpu


# ----------------------------------------------------------------------------
# Tiled fused matmul kernel:  out = act(x @ w + bias)   (BN scale folded into w)
# ----------------------------------------------------------------------------
_TM_MAX = 256    # rows per block (sublane axis)
_TN_MAX = 256    # output cols per block (lane axis, multiple of 128)
_TK_MAX = 512    # contraction cols per block (multiple of 128)
# Worst-case per-step VMEM (double-buffered inputs):
#   x 256x512 bf16 + w 512x256 bf16 (x2 each) + out 256x256 + acc 256x256 f32 ~ 1.8 MiB
# -> comfortably inside the 32 MiB scoped default on v5e/v6e/v7x (64 MiB phys on v7x).
_VMEM_LIMIT = 32 * 1024 * 1024


def _round_up(x, m):
    return ((x + m - 1) // m) * m


def _fused_matmul_kernel(x_ref, w_ref, b_ref, o_ref, acc_ref, *, act):
    """Grid (M/tm, N/tn, K/tk); f32 accumulator; bias + activation epilogue."""
    @pl.when(pl.program_id(2) == 0)
    def _():
        acc_ref[...] = jnp.zeros_like(acc_ref)

    acc_ref[...] += jnp.dot(x_ref[...], w_ref[...],
                            preferred_element_type=jnp.float32)

    @pl.when(pl.program_id(2) == pl.num_programs(2) - 1)
    def _():
        y = acc_ref[...] + b_ref[...]      # BN scale pre-folded into w: bias-only epilogue
        if act == "relu":
            y = jnp.maximum(y, 0.0)
        elif act == "sigmoid":
            # EUP tanh formulation: exact [0, 1] range, no VALU divide.
            y = 0.5 * (jnp.tanh(0.5 * y) + 1.0)
        o_ref[...] = y.astype(o_ref.dtype)


def _pad2d(a, rows, cols):
    r, c = a.shape
    if r == rows and c == cols:
        return a
    return jnp.pad(a, ((0, rows - r), (0, cols - c)))


def fused_matmul(x, w, bias, act="none", out_dtype=jnp.bfloat16):
    """x: [M, K], w: [K, N] (scale folded), bias: [N].  Tiled, pipelined Pallas matmul."""
    M, K = x.shape
    K2, N = w.shape
    assert K == K2, (K, K2)

    tm = min(_TM_MAX, _round_up(M, 16))
    tn = min(_TN_MAX, _round_up(N, 128))
    tk = min(_TK_MAX, _round_up(K, 128))
    m_pad, n_pad, k_pad = _round_up(M, tm), _round_up(N, tn), _round_up(K, tk)

    xp = _pad2d(x.astype(jnp.bfloat16), m_pad, k_pad)
    wp = _pad2d(w.astype(jnp.bfloat16), k_pad, n_pad)
    bp = _pad2d(bias.reshape(1, N).astype(jnp.float32), 1, n_pad)

    out = pl.pallas_call(
        functools.partial(_fused_matmul_kernel, act=act),
        out_shape=jax.ShapeDtypeStruct((m_pad, n_pad), out_dtype),
        grid_spec=pltpu.PrefetchScalarGridSpec(
            num_scalar_prefetch=0,
            grid=(m_pad // tm, n_pad // tn, k_pad // tk),
            in_specs=[
                pl.BlockSpec((tm, tk), lambda i, j, k: (i, k)),
                pl.BlockSpec((tk, tn), lambda i, j, k: (k, j)),
                pl.BlockSpec((1, tn), lambda i, j, k: (0, j)),
            ],
            out_specs=pl.BlockSpec((tm, tn), lambda i, j, k: (i, j)),
            scratch_shapes=[pltpu.VMEM((tm, tn), jnp.float32)],
        ),
        compiler_params=pltpu.CompilerParams(
            dimension_semantics=("parallel", "parallel", "arbitrary"),
            vmem_limit_bytes=_VMEM_LIMIT,
        ),
    )(xp, wp, bp)
    return out[:M, :N]


# ----------------------------------------------------------------------------
# Plain-JAX glue: NHWC im2col + layer wrappers
# TODO(synk): patch extraction could be fused into the kernel (manual DMA from a
# pl.ANY HBM ref over overlapping windows) to avoid materializing patches in HBM.
# ----------------------------------------------------------------------------
def _im2col_nhwc(xp, k, s):
    """xp: [B, H, W, C] already padded.  Returns [B*Ho*Wo, k*k*C] (kh, kw, c order)."""
    B, H, W, C = xp.shape
    Ho = (H - k) // s + 1
    Wo = (W - k) // s + 1
    cols = []
    for i in range(k):
        for j in range(k):
            cols.append(xp[:, i:i + s * Ho:s, j:j + s * Wo:s, :])
    patches = jnp.concatenate(cols, axis=-1)           # [B, Ho, Wo, k*k*C]
    return patches.reshape(B * Ho * Wo, k * k * C), Ho, Wo


def conv_bn_act(x, layer, act):
    """Conv2d(k=4, s=2, p=1) + BN + act, NHWC.  layer['wmat']: [16*Ci, Co]."""
    B = x.shape[0]
    xp = jnp.pad(x, ((0, 0), (1, 1), (1, 1), (0, 0)))
    patches, Ho, Wo = _im2col_nhwc(xp, 4, 2)
    Co = layer["wmat"].shape[1]
    y = fused_matmul(patches, layer["wmat"], layer["bias"], act)
    return y.reshape(B, Ho, Wo, Co)


def deconv_bn_act(x, layer, act, out_dtype=jnp.bfloat16):
    """ConvTranspose2d(k=4, s=2, p=1) + BN + act via sub-pixel decomposition, NHWC.

    layer['wmat']: [9*Ci, 4*Co] — the 4 output phases share a 3x3 input window and are
    computed by a single lane-dense matmul, then pixel-shuffled to [B, 2H, 2W, Co].
    """
    B, H, W, Ci = x.shape
    Co = layer["wmat"].shape[1] // 4
    xp = jnp.pad(x, ((0, 0), (1, 1), (1, 1), (0, 0)))
    patches, _, _ = _im2col_nhwc(xp, 3, 1)              # [B*H*W, 9*Ci]
    y = fused_matmul(patches, layer["wmat"], layer["bias"], act, out_dtype=out_dtype)
    y = y.reshape(B, H, W, 2, 2, Co).transpose(0, 1, 3, 2, 4, 5)
    return y.reshape(B, 2 * H, 2 * W, Co)


def linear_bn_act(x, layer, act, out_dtype=jnp.bfloat16):
    return fused_matmul(x, layer["wmat"], layer["bias"], act, out_dtype=out_dtype)


# ----------------------------------------------------------------------------
# Parameter preparation: fold BN into weights/bias, pre-transpose / phase-pack.
# ----------------------------------------------------------------------------
def _fold_bn(conv_bias, bn):
    gamma, beta, rm, rv, eps = bn
    s = gamma / jnp.sqrt(rv + eps)
    return s, (conv_bias - rm) * s + beta


def _prep_conv(w_pt, b, bn):
    # w_pt: [Co, Ci, 4, 4] -> [(kh, kw, ci), Co], scale folded into columns.
    s, bias = _fold_bn(b, bn)
    Co = w_pt.shape[0]
    wmat = w_pt.transpose(2, 3, 1, 0).reshape(-1, Co) * s[None, :]
    return {"wmat": wmat.astype(jnp.bfloat16), "bias": bias.astype(jnp.float32)}


def _prep_deconv(w_pt, b, bn):
    # w_pt: [Ci, Co, 4, 4] (PyTorch ConvTranspose2d layout).
    Ci, Co = w_pt.shape[0], w_pt.shape[1]
    s, bias = _fold_bn(b, bn)
    # Equivalent stride-1 conv taps (flipped), NHWC order: [kh, kw, Ci, Co].
    w_eq = jnp.flip(w_pt, axis=(2, 3)).transpose(2, 3, 0, 1)
    # Pack the 4 output phases over the shared 3x3 input window.
    w_comb = jnp.zeros((3, 3, Ci, 2, 2, Co), w_pt.dtype)
    for rh in range(2):
        for rw in range(2):
            for dh in range(2):
                for dw in range(2):
                    w_comb = w_comb.at[dh + rh, dw + rw, :, rh, rw, :].set(
                        w_eq[2 * dh + rh, 2 * dw + rw])
    wmat = w_comb.reshape(9 * Ci, 4 * Co) * jnp.tile(s, 4)[None, :]
    return {"wmat": wmat.astype(jnp.bfloat16),
            "bias": jnp.tile(bias, 4).astype(jnp.float32)}


def _prep_enc_fc(w_pt, b, bn, c, h, w):
    # w_pt: [2z, c*h*w] with (c, h, w) column order; our flatten is NHWC (h, w, c).
    s, bias = _fold_bn(b, bn)
    out = w_pt.shape[0]
    wmat = w_pt.reshape(out, c, h, w).transpose(0, 2, 3, 1).reshape(out, -1).T
    return {"wmat": (wmat * s[None, :]).astype(jnp.bfloat16),
            "bias": bias.astype(jnp.float32)}


def _prep_dec_fc(w_pt, b, bn, c, h, w):
    # w_pt: [c*h*w, z] with (c, h, w) output order; permute outputs to NHWC (h, w, c).
    s, bias = _fold_bn(b, bn)
    z = w_pt.shape[1]
    perm = lambda v: v.reshape(c, h, w).transpose(1, 2, 0).reshape(-1)
    wmat = w_pt.reshape(c, h, w, z).transpose(1, 2, 0, 3).reshape(-1, z).T
    wmat = wmat * perm(s)[None, :]
    return {"wmat": wmat.astype(jnp.bfloat16), "bias": perm(bias).astype(jnp.float32)}


def prepare_params(raw, in_size, hidden_channels):
    lir = in_size // (2 ** len(hidden_channels))
    c_last = hidden_channels[-1]
    return {
        "enc_convs": [_prep_conv(l["w"], l["b"], l["bn"]) for l in raw["enc_convs"]],
        "enc_fc": _prep_enc_fc(raw["enc_fc"]["w"], raw["enc_fc"]["b"],
                               raw["enc_fc"]["bn"], c_last, lir, lir),
        "dec_fc": _prep_dec_fc(raw["dec_fc"]["w"], raw["dec_fc"]["b"],
                               raw["dec_fc"]["bn"], c_last, lir, lir),
        "dec_convs": [_prep_deconv(l["w"], l["b"], l["bn"]) for l in raw["dec_convs"]],
    }


# ----------------------------------------------------------------------------
# Deterministic raw-parameter construction (PyTorch layouts, shapes from ConvVAE)
# ----------------------------------------------------------------------------
def _bn_params(key, n):
    k1, k2, k3, k4 = jax.random.split(key, 4)
    gamma = 1.0 + 0.05 * jax.random.normal(k1, (n,), jnp.float32)
    beta = 0.05 * jax.random.normal(k2, (n,), jnp.float32)
    rm = 0.02 * jax.random.normal(k3, (n,), jnp.float32)
    rv = 1.0 + 0.1 * jax.nn.softplus(jax.random.normal(k4, (n,), jnp.float32))
    return (gamma, beta, rm, rv, 1e-5)


def init_raw_params(key, in_size, in_channels, latent_dim, hidden_channels):
    assert in_size % (2 ** len(hidden_channels)) == 0
    lir = in_size // (2 ** len(hidden_channels))
    flat = hidden_channels[-1] * lir * lir
    keys = iter(jax.random.split(key, 64))
    p = {}

    enc_convs = []
    chans = [in_channels] + list(hidden_channels)
    for ci, co in zip(chans[:-1], chans[1:]):
        enc_convs.append({
            "w": 0.1 * jax.random.normal(next(keys), (co, ci, 4, 4), jnp.float32),
            "b": 0.05 * jax.random.normal(next(keys), (co,), jnp.float32),
            "bn": _bn_params(next(keys), co),
        })
    p["enc_convs"] = enc_convs

    p["enc_fc"] = {
        "w": 0.05 * jax.random.normal(next(keys), (2 * latent_dim, flat), jnp.float32),
        "b": 0.05 * jax.random.normal(next(keys), (2 * latent_dim,), jnp.float32),
        "bn": _bn_params(next(keys), 2 * latent_dim),
    }
    p["dec_fc"] = {
        "w": 0.05 * jax.random.normal(next(keys), (flat, latent_dim), jnp.float32),
        "b": 0.05 * jax.random.normal(next(keys), (flat,), jnp.float32),
        "bn": _bn_params(next(keys), flat),
    }

    dec_convs = []
    rev = list(hidden_channels[::-1]) + [in_channels]
    for ci, co in zip(rev[:-1], rev[1:]):
        dec_convs.append({
            "w": 0.1 * jax.random.normal(next(keys), (ci, co, 4, 4), jnp.float32),
            "b": 0.05 * jax.random.normal(next(keys), (co,), jnp.float32),
            "bn": _bn_params(next(keys), co),
        })
    p["dec_convs"] = dec_convs
    return p


# ----------------------------------------------------------------------------
# Forward pass (mirrors ConvVAE.forward; activations NHWC bf16 internally)
# ----------------------------------------------------------------------------
def conv_vae_forward(params, x_nchw, eps_key, *, lir, hidden_last):
    B = x_nchw.shape[0]
    x = jnp.transpose(x_nchw, (0, 2, 3, 1)).astype(jnp.bfloat16)   # NCHW -> NHWC once

    # ----- encode -----
    h = x
    for layer in params["enc_convs"]:
        h = conv_bn_act(h, layer, "relu")
    h_flat = h.reshape(B, -1)                                      # (h, w, c) flatten
    enc = linear_bn_act(h_flat, params["enc_fc"], "none", out_dtype=jnp.float32)
    z_dim = enc.shape[1] // 2
    mu, log_var = enc[:, :z_dim], enc[:, z_dim:]

    # ----- reparameterize: tiny [B, z] elementwise op, plain JAX (launch overhead) -----
    eps = jax.random.normal(eps_key, mu.shape, dtype=mu.dtype)
    z = mu + eps * jnp.exp(0.5 * log_var)

    # ----- decode -----
    d = linear_bn_act(z, params["dec_fc"], "relu")
    d = d.reshape(B, lir, lir, hidden_last)
    for layer in params["dec_convs"][:-1]:
        d = deconv_bn_act(d, layer, "relu")
    recon = deconv_bn_act(d, params["dec_convs"][-1], "sigmoid", out_dtype=jnp.float32)
    return jnp.transpose(recon, (0, 3, 1, 2)), mu, log_var          # NHWC -> NCHW once


# ----------------------------------------------------------------------------
if __name__ == "__main__":
    in_size = 16
    in_channels = 4
    latent_dim = 8
    hidden_channels = [8, 16]
    batch = 2

    root = jax.random.PRNGKey(0)
    k_param, k_x, k_eps = jax.random.split(root, 3)

    raw = init_raw_params(k_param, in_size, in_channels, latent_dim, hidden_channels)
    params = prepare_params(raw, in_size, hidden_channels)
    x = jax.random.normal(k_x, (batch, in_channels, in_size, in_size), jnp.float32)

    lir = in_size // (2 ** len(hidden_channels))
    fwd = jax.jit(functools.partial(conv_vae_forward,
                                    lir=lir, hidden_last=hidden_channels[-1]))
    recon, mu, log_var = fwd(params, x, k_eps)
    jax.block_until_ready((recon, mu, log_var))

    assert recon.shape == (batch, in_channels, in_size, in_size)
    assert mu.shape == (batch, latent_dim) and log_var.shape == (batch, latent_dim)
    assert bool(jnp.all(jnp.isfinite(recon)))
    assert bool(jnp.all((recon >= 0.0) & (recon <= 1.0)))   # sigmoid output
    print("KERNEL_OK")
</pallas_src>

<mosaic_0001>
module attributes {stable_mosaic.version = 11 : i64} {
  func.func @_fused_matmul_kernel(%arg0: i32, %arg1: i32, %arg2: i32, %arg3: memref<128x128xbf16, #tpu.memory_space<vmem>>, %arg4: memref<128x128xbf16, #tpu.memory_space<vmem>>, %arg5: memref<1x128xf32, #tpu.memory_space<vmem>>, %arg6: memref<128x128xbf16, #tpu.memory_space<vmem>>, %arg7: memref<128x128xf32, #tpu.memory_space<vmem>>) attributes {dimension_semantics = [#tpu.dimension_semantics<parallel>, #tpu.dimension_semantics<parallel>, #tpu.dimension_semantics<arbitrary>], iteration_bounds = array<i64: 1, 1, 1>, scalar_prefetch = 0 : i64, scratch_operands = 1 : i64, tpu.core_type = #tpu.core_type<tc>, window_params = [{transform_indices = @transform_0, window_bounds = array<i64: 128, 128>}, {transform_indices = @transform_1, window_bounds = array<i64: 128, 128>}, {transform_indices = @transform_2, window_bounds = array<i64: 1, 128>}, {transform_indices = @transform_3, window_bounds = array<i64: 128, 128>}]} {
    %c0_i32 = arith.constant 0 : i32
    %0 = arith.cmpi eq, %arg2, %c0_i32 : i32
    %1 = arith.extui %0 : i1 to i32
    %c0_i32_0 = arith.constant 0 : i32
    %2 = arith.cmpi ne, %1, %c0_i32_0 : i32
    scf.if %2 {
      %cst_10 = arith.constant 0.000000e+00 : f32
      %12 = vector.broadcast %cst_10 : f32 to vector<128x128xf32>
      %c0_11 = arith.constant 0 : index
      %c0_12 = arith.constant 0 : index
      %13 = vector.load %arg7[%c0_11, %c0_12] : memref<128x128xf32, #tpu.memory_space<vmem>>, vector<128x128xf32>
      tpu.vector_store %arg7[%c0_11, %c0_12], %12 {strides = array<i32>} : memref<128x128xf32, #tpu.memory_space<vmem>>, vector<128x128xf32>,
    } else {
    }
    %c0 = arith.constant 0 : index
    %c0_1 = arith.constant 0 : index
    %3 = vector.load %arg7[%c0, %c0_1] : memref<128x128xf32, #tpu.memory_space<vmem>>, vector<128x128xf32>
    %c0_2 = arith.constant 0 : index
    %c0_3 = arith.constant 0 : index
    %4 = vector.load %arg3[%c0_2, %c0_3] : memref<128x128xbf16, #tpu.memory_space<vmem>>, vector<128x128xbf16>
    %c0_4 = arith.constant 0 : index
    %c0_5 = arith.constant 0 : index
    %5 = vector.load %arg4[%c0_4, %c0_5] : memref<128x128xbf16, #tpu.memory_space<vmem>>, vector<128x128xbf16>
    %cst = arith.constant dense<0.000000e+00> : vector<128x128xf32>
    %6 = tpu.matmul %4, %5, %cst {dimension_numbers = #tpu.dot_dimension_numbers<[1], [0], [0], [1], [0, 0, 1, 1], [], []>} : vector<128x128xbf16>, vector<128x128xbf16>, vector<128x128xf32> -> vector<128x128xf32>
    %7 = arith.addf %3, %6 : vector<128x128xf32>
    %c0_6 = arith.constant 0 : index
    %c0_7 = arith.constant 0 : index
    %8 = vector.load %arg7[%c0_6, %c0_7] : memref<128x128xf32, #tpu.memory_space<vmem>>, vector<128x128xf32>
    tpu.vector_store %arg7[%c0_6, %c0_7], %7 {strides = array<i32>} : memref<128x128xf32, #tpu.memory_space<vmem>>, vector<128x128xf32>,
    %c0_i32_8 = arith.constant 0 : i32
    %9 = arith.cmpi eq, %arg2, %c0_i32_8 : i32
    %10 = arith.extui %9 : i1 to i32
    %c0_i32_9 = arith.constant 0 : i32
    %11 = arith.cmpi ne, %10, %c0_i32_9 : i32
    scf.if %11 {
      %c0_10 = arith.constant 0 : index
      %c0_11 = arith.constant 0 : index
      %12 = vector.load %arg7[%c0_10, %c0_11] : memref<128x128xf32, #tpu.memory_space<vmem>>, vector<128x128xf32>
      %c0_12 = arith.constant 0 : index
      %c0_13 = arith.constant 0 : index
      %13 = vector.load %arg5[%c0_12, %c0_13] : memref<1x128xf32, #tpu.memory_space<vmem>>, vector<1x128xf32>
      %14 = vector.broadcast %13 : vector<1x128xf32> to vector<128x128xf32>
      %15 = arith.addf %12, %14 : vector<128x128xf32>
      %cst_14 = arith.constant 0.000000e+00 : f32
      %16 = vector.broadcast %cst_14 : f32 to vector<128x128xf32>
      %17 = arith.maximumf %15, %16 : vector<128x128xf32>
      %18 = arith.truncf %17 : vector<128x128xf32> to vector<128x128xbf16>
      %c0_15 = arith.constant 0 : index
      %c0_16 = arith.constant 0 : index
      %19 = vector.load %arg6[%c0_15, %c0_16] : memref<128x128xbf16, #tpu.memory_space<vmem>>, vector<128x128xbf16>
      tpu.vector_store %arg6[%c0_15, %c0_16], %18 {strides = array<i32>} : memref<128x128xbf16, #tpu.memory_space<vmem>>, vector<128x128xbf16>,
    } else {
    }
    return
  }
  func.func @transform_0(%arg0: i32, %arg1: i32, %arg2: i32) -> (i32, i32) {
    %c0_i32 = arith.constant 0 : i32
    return %arg0, %arg2 : i32, i32
  }
  func.func @transform_1(%arg0: i32, %arg1: i32, %arg2: i32) -> (i32, i32) {
    %c0_i32 = arith.constant 0 : i32
    return %arg2, %arg1 : i32, i32
  }
  func.func @transform_2(%arg0: i32, %arg1: i32, %arg2: i32) -> (i32, i32) {
    %c0_i32 = arith.constant 0 : i32
    %c0_i32_0 = arith.constant 0 : i32
    return %c0_i32, %arg1 : i32, i32
  }
  func.func @transform_3(%arg0: i32, %arg1: i32, %arg2: i32) -> (i32, i32) {
    %c0_i32 = arith.constant 0 : i32
    return %arg0, %arg1 : i32, i32
  }
}

module attributes {stable_mosaic.version = 11 : i64} {
  func.func @_fused_matmul_kernel(%arg0: i32, %arg1: i32, %arg2: i32, %arg3: memref<32x128xbf16, #tpu.memory_space<vmem>>, %arg4: memref<128x128xbf16, #tpu.memory_space<vmem>>, %arg5: memref<1x128xf32, #tpu.memory_space<vmem>>, %arg6: memref<32x128xbf16, #tpu.memory_space<vmem>>, %arg7: memref<32x128xf32, #tpu.memory_space<vmem>>) attributes {dimension_semantics = [#tpu.dimension_semantics<parallel>, #tpu.dimension_semantics<parallel>, #tpu.dimension_semantics<arbitrary>], iteration_bounds = array<i64: 1, 1, 1>, scalar_prefetch = 0 : i64, scratch_operands = 1 : i64, tpu.core_type = #tpu.core_type<tc>, window_params = [{transform_indices = @transform_0, window_bounds = array<i64: 32, 128>}, {transform_indices = @transform_1, window_bounds = array<i64: 128, 128>}, {transform_indices = @transform_2, window_bounds = array<i64: 1, 128>}, {transform_indices = @transform_3, window_bounds = array<i64: 32, 128>}]} {
    %c0_i32 = arith.constant 0 : i32
    %0 = arith.cmpi eq, %arg2, %c0_i32 : i32
    %1 = arith.extui %0 : i1 to i32
    %c0_i32_0 = arith.constant 0 : i32
    %2 = arith.cmpi ne, %1, %c0_i32_0 : i32
    scf.if %2 {
      %cst_10 = arith.constant 0.000000e+00 : f32
      %12 = vector.broadcast %cst_10 : f32 to vector<32x128xf32>
      %c0_11 = arith.constant 0 : index
      %c0_12 = arith.constant 0 : index
      %13 = vector.load %arg7[%c0_11, %c0_12] : memref<32x128xf32, #tpu.memory_space<vmem>>, vector<32x128xf32>
      tpu.vector_store %arg7[%c0_11, %c0_12], %12 {strides = array<i32>} : memref<32x128xf32, #tpu.memory_space<vmem>>, vector<32x128xf32>,
    } else {
    }
    %c0 = arith.constant 0 : index
    %c0_1 = arith.constant 0 : index
    %3 = vector.load %arg7[%c0, %c0_1] : memref<32x128xf32, #tpu.memory_space<vmem>>, vector<32x128xf32>
    %c0_2 = arith.constant 0 : index
    %c0_3 = arith.constant 0 : index
    %4 = vector.load %arg3[%c0_2, %c0_3] : memref<32x128xbf16, #tpu.memory_space<vmem>>, vector<32x128xbf16>
    %c0_4 = arith.constant 0 : index
    %c0_5 = arith.constant 0 : index
    %5 = vector.load %arg4[%c0_4, %c0_5] : memref<128x128xbf16, #tpu.memory_space<vmem>>, vector<128x128xbf16>
    %cst = arith.constant dense<0.000000e+00> : vector<32x128xf32>
    %6 = tpu.matmul %4, %5, %cst {dimension_numbers = #tpu.dot_dimension_numbers<[1], [0], [0], [1], [0, 0, 1, 1], [], []>} : vector<32x128xbf16>, vector<128x128xbf16>, vector<32x128xf32> -> vector<32x128xf32>
    %7 = arith.addf %3, %6 : vector<32x128xf32>
    %c0_6 = arith.constant 0 : index
    %c0_7 = arith.constant 0 : index
    %8 = vector.load %arg7[%c0_6, %c0_7] : memref<32x128xf32, #tpu.memory_space<vmem>>, vector<32x128xf32>
    tpu.vector_store %arg7[%c0_6, %c0_7], %7 {strides = array<i32>} : memref<32x128xf32, #tpu.memory_space<vmem>>, vector<32x128xf32>,
    %c0_i32_8 = arith.constant 0 : i32
    %9 = arith.cmpi eq, %arg2, %c0_i32_8 : i32
    %10 = arith.extui %9 : i1 to i32
    %c0_i32_9 = arith.constant 0 : i32
    %11 = arith.cmpi ne, %10, %c0_i32_9 : i32
    scf.if %11 {
      %c0_10 = arith.constant 0 : index
      %c0_11 = arith.constant 0 : index
      %12 = vector.load %arg7[%c0_10, %c0_11] : memref<32x128xf32, #tpu.memory_space<vmem>>, vector<32x128xf32>
      %c0_12 = arith.constant 0 : index
      %c0_13 = arith.constant 0 : index
      %13 = vector.load %arg5[%c0_12, %c0_13] : memref<1x128xf32, #tpu.memory_space<vmem>>, vector<1x128xf32>
      %14 = vector.broadcast %13 : vector<1x128xf32> to vector<32x128xf32>
      %15 = arith.addf %12, %14 : vector<32x128xf32>
      %cst_14 = arith.constant 0.000000e+00 : f32
      %16 = vector.broadcast %cst_14 : f32 to vector<32x128xf32>
      %17 = arith.maximumf %15, %16 : vector<32x128xf32>
      %18 = arith.truncf %17 : vector<32x128xf32> to vector<32x128xbf16>
      %c0_15 = arith.constant 0 : index
      %c0_16 = arith.constant 0 : index
      %19 = vector.load %arg6[%c0_15, %c0_16] : memref<32x128xbf16, #tpu.memory_space<vmem>>, vector<32x128xbf16>
      tpu.vector_store %arg6[%c0_15, %c0_16], %18 {strides = array<i32>} : memref<32x128xbf16, #tpu.memory_space<vmem>>, vector<32x128xbf16>,
    } else {
    }
    return
  }
  func.func @transform_0(%arg0: i32, %arg1: i32, %arg2: i32) -> (i32, i32) {
    %c0_i32 = arith.constant 0 : i32
    return %arg0, %arg2 : i32, i32
  }
  func.func @transform_1(%arg0: i32, %arg1: i32, %arg2: i32) -> (i32, i32) {
    %c0_i32 = arith.constant 0 : i32
    return %arg2, %arg1 : i32, i32
  }
  func.func @transform_2(%arg0: i32, %arg1: i32, %arg2: i32) -> (i32, i32) {
    %c0_i32 = arith.constant 0 : i32
    %c0_i32_0 = arith.constant 0 : i32
    return %c0_i32, %arg1 : i32, i32
  }
  func.func @transform_3(%arg0: i32, %arg1: i32, %arg2: i32) -> (i32, i32) {
    %c0_i32 = arith.constant 0 : i32
    return %arg0, %arg1 : i32, i32
  }
}

module attributes {stable_mosaic.version = 11 : i64} {
  func.func @_fused_matmul_kernel(%arg0: i32, %arg1: i32, %arg2: i32, %arg3: memref<16x256xbf16, #tpu.memory_space<vmem>>, %arg4: memref<256x128xbf16, #tpu.memory_space<vmem>>, %arg5: memref<1x128xf32, #tpu.memory_space<vmem>>, %arg6: memref<16x128xf32, #tpu.memory_space<vmem>>, %arg7: memref<16x128xf32, #tpu.memory_space<vmem>>) attributes {dimension_semantics = [#tpu.dimension_semantics<parallel>, #tpu.dimension_semantics<parallel>, #tpu.dimension_semantics<arbitrary>], iteration_bounds = array<i64: 1, 1, 1>, scalar_prefetch = 0 : i64, scratch_operands = 1 : i64, tpu.core_type = #tpu.core_type<tc>, window_params = [{transform_indices = @transform_0, window_bounds = array<i64: 16, 256>}, {transform_indices = @transform_1, window_bounds = array<i64: 256, 128>}, {transform_indices = @transform_2, window_bounds = array<i64: 1, 128>}, {transform_indices = @transform_3, window_bounds = array<i64: 16, 128>}]} {
    %c0_i32 = arith.constant 0 : i32
    %0 = arith.cmpi eq, %arg2, %c0_i32 : i32
    %1 = arith.extui %0 : i1 to i32
    %c0_i32_0 = arith.constant 0 : i32
    %2 = arith.cmpi ne, %1, %c0_i32_0 : i32
    scf.if %2 {
      %cst_10 = arith.constant 0.000000e+00 : f32
      %12 = vector.broadcast %cst_10 : f32 to vector<16x128xf32>
      %c0_11 = arith.constant 0 : index
      %c0_12 = arith.constant 0 : index
      %13 = vector.load %arg7[%c0_11, %c0_12] : memref<16x128xf32, #tpu.memory_space<vmem>>, vector<16x128xf32>
      tpu.vector_store %arg7[%c0_11, %c0_12], %12 {strides = array<i32>} : memref<16x128xf32, #tpu.memory_space<vmem>>, vector<16x128xf32>,
    } else {
    }
    %c0 = arith.constant 0 : index
    %c0_1 = arith.constant 0 : index
    %3 = vector.load %arg7[%c0, %c0_1] : memref<16x128xf32, #tpu.memory_space<vmem>>, vector<16x128xf32>
    %c0_2 = arith.constant 0 : index
    %c0_3 = arith.constant 0 : index
    %4 = vector.load %arg3[%c0_2, %c0_3] : memref<16x256xbf16, #tpu.memory_space<vmem>>, vector<16x256xbf16>
    %c0_4 = arith.constant 0 : index
    %c0_5 = arith.constant 0 : index
    %5 = vector.load %arg4[%c0_4, %c0_5] : memref<256x128xbf16, #tpu.memory_space<vmem>>, vector<256x128xbf16>
    %cst = arith.constant dense<0.000000e+00> : vector<16x128xf32>
    %6 = tpu.matmul %4, %5, %cst {dimension_numbers = #tpu.dot_dimension_numbers<[1], [0], [0], [1], [0, 0, 1, 1], [], []>} : vector<16x256xbf16>, vector<256x128xbf16>, vector<16x128xf32> -> vector<16x128xf32>
    %7 = arith.addf %3, %6 : vector<16x128xf32>
    %c0_6 = arith.constant 0 : index
    %c0_7 = arith.constant 0 : index
    %8 = vector.load %arg7[%c0_6, %c0_7] : memref<16x128xf32, #tpu.memory_space<vmem>>, vector<16x128xf32>
    tpu.vector_store %arg7[%c0_6, %c0_7], %7 {strides = array<i32>} : memref<16x128xf32, #tpu.memory_space<vmem>>, vector<16x128xf32>,
    %c0_i32_8 = arith.constant 0 : i32
    %9 = arith.cmpi eq, %arg2, %c0_i32_8 : i32
    %10 = arith.extui %9 : i1 to i32
    %c0_i32_9 = arith.constant 0 : i32
    %11 = arith.cmpi ne, %10, %c0_i32_9 : i32
    scf.if %11 {
      %c0_10 = arith.constant 0 : index
      %c0_11 = arith.constant 0 : index
      %12 = vector.load %arg7[%c0_10, %c0_11] : memref<16x128xf32, #tpu.memory_space<vmem>>, vector<16x128xf32>
      %c0_12 = arith.constant 0 : index
      %c0_13 = arith.constant 0 : index
      %13 = vector.load %arg5[%c0_12, %c0_13] : memref<1x128xf32, #tpu.memory_space<vmem>>, vector<1x128xf32>
      %14 = vector.broadcast %13 : vector<1x128xf32> to vector<16x128xf32>
      %15 = arith.addf %12, %14 : vector<16x128xf32>
      %c0_14 = arith.constant 0 : index
      %c0_15 = arith.constant 0 : index
      %16 = vector.load %arg6[%c0_14, %c0_15] : memref<16x128xf32, #tpu.memory_space<vmem>>, vector<16x128xf32>
      tpu.vector_store %arg6[%c0_14, %c0_15], %15 {strides = array<i32>} : memref<16x128xf32, #tpu.memory_space<vmem>>, vector<16x128xf32>,
    } else {
    }
    return
  }
  func.func @transform_0(%arg0: i32, %arg1: i32, %arg2: i32) -> (i32, i32) {
    %c0_i32 = arith.constant 0 : i32
    return %arg0, %arg2 : i32, i32
  }
  func.func @transform_1(%arg0: i32, %arg1: i32, %arg2: i32) -> (i32, i32) {
    %c0_i32 = arith.constant 0 : i32
    return %arg2, %arg1 : i32, i32
  }
  func.func @transform_2(%arg0: i32, %arg1: i32, %arg2: i32) -> (i32, i32) {
    %c0_i32 = arith.constant 0 : i32
    %c0_i32_0 = arith.constant 0 : i32
    return %c0_i32, %arg1 : i32, i32
  }
  func.func @transform_3(%arg0: i32, %arg1: i32, %arg2: i32) -> (i32, i32) {
    %c0_i32 = arith.constant 0 : i32
    return %arg0, %arg1 : i32, i32
  }
}

module attributes {stable_mosaic.version = 11 : i64} {
  func.func @_fused_matmul_kernel(%arg0: i32, %arg1: i32, %arg2: i32, %arg3: memref<16x128xbf16, #tpu.memory_space<vmem>>, %arg4: memref<128x256xbf16, #tpu.memory_space<vmem>>, %arg5: memref<1x256xf32, #tpu.memory_space<vmem>>, %arg6: memref<16x256xbf16, #tpu.memory_space<vmem>>, %arg7: memref<16x256xf32, #tpu.memory_space<vmem>>) attributes {dimension_semantics = [#tpu.dimension_semantics<parallel>, #tpu.dimension_semantics<parallel>, #tpu.dimension_semantics<arbitrary>], iteration_bounds = array<i64: 1, 1, 1>, scalar_prefetch = 0 : i64, scratch_operands = 1 : i64, tpu.core_type = #tpu.core_type<tc>, window_params = [{transform_indices = @transform_0, window_bounds = array<i64: 16, 128>}, {transform_indices = @transform_1, window_bounds = array<i64: 128, 256>}, {transform_indices = @transform_2, window_bounds = array<i64: 1, 256>}, {transform_indices = @transform_3, window_bounds = array<i64: 16, 256>}]} {
    %c0_i32 = arith.constant 0 : i32
    %0 = arith.cmpi eq, %arg2, %c0_i32 : i32
    %1 = arith.extui %0 : i1 to i32
    %c0_i32_0 = arith.constant 0 : i32
    %2 = arith.cmpi ne, %1, %c0_i32_0 : i32
    scf.if %2 {
      %cst_10 = arith.constant 0.000000e+00 : f32
      %12 = vector.broadcast %cst_10 : f32 to vector<16x256xf32>
      %c0_11 = arith.constant 0 : index
      %c0_12 = arith.constant 0 : index
      %13 = vector.load %arg7[%c0_11, %c0_12] : memref<16x256xf32, #tpu.memory_space<vmem>>, vector<16x256xf32>
      tpu.vector_store %arg7[%c0_11, %c0_12], %12 {strides = array<i32>} : memref<16x256xf32, #tpu.memory_space<vmem>>, vector<16x256xf32>,
    } else {
    }
    %c0 = arith.constant 0 : index
    %c0_1 = arith.constant 0 : index
    %3 = vector.load %arg7[%c0, %c0_1] : memref<16x256xf32, #tpu.memory_space<vmem>>, vector<16x256xf32>
    %c0_2 = arith.constant 0 : index
    %c0_3 = arith.constant 0 : index
    %4 = vector.load %arg3[%c0_2, %c0_3] : memref<16x128xbf16, #tpu.memory_space<vmem>>, vector<16x128xbf16>
    %c0_4 = arith.constant 0 : index
    %c0_5 = arith.constant 0 : index
    %5 = vector.load %arg4[%c0_4, %c0_5] : memref<128x256xbf16, #tpu.memory_space<vmem>>, vector<128x256xbf16>
    %cst = arith.constant dense<0.000000e+00> : vector<16x256xf32>
    %6 = tpu.matmul %4, %5, %cst {dimension_numbers = #tpu.dot_dimension_numbers<[1], [0], [0], [1], [0, 0, 1, 1], [], []>} : vector<16x128xbf16>, vector<128x256xbf16>, vector<16x256xf32> -> vector<16x256xf32>
    %7 = arith.addf %3, %6 : vector<16x256xf32>
    %c0_6 = arith.constant 0 : index
    %c0_7 = arith.constant 0 : index
    %8 = vector.load %arg7[%c0_6, %c0_7] : memref<16x256xf32, #tpu.memory_space<vmem>>, vector<16x256xf32>
    tpu.vector_store %arg7[%c0_6, %c0_7], %7 {strides = array<i32>} : memref<16x256xf32, #tpu.memory_space<vmem>>, vector<16x256xf32>,
    %c0_i32_8 = arith.constant 0 : i32
    %9 = arith.cmpi eq, %arg2, %c0_i32_8 : i32
    %10 = arith.extui %9 : i1 to i32
    %c0_i32_9 = arith.constant 0 : i32
    %11 = arith.cmpi ne, %10, %c0_i32_9 : i32
    scf.if %11 {
      %c0_10 = arith.constant 0 : index
      %c0_11 = arith.constant 0 : index
      %12 = vector.load %arg7[%c0_10, %c0_11] : memref<16x256xf32, #tpu.memory_space<vmem>>, vector<16x256xf32>
      %c0_12 = arith.constant 0 : index
      %c0_13 = arith.constant 0 : index
      %13 = vector.load %arg5[%c0_12, %c0_13] : memref<1x256xf32, #tpu.memory_space<vmem>>, vector<1x256xf32>
      %14 = vector.broadcast %13 : vector<1x256xf32> to vector<16x256xf32>
      %15 = arith.addf %12, %14 : vector<16x256xf32>
      %cst_14 = arith.constant 0.000000e+00 : f32
      %16 = vector.broadcast %cst_14 : f32 to vector<16x256xf32>
      %17 = arith.maximumf %15, %16 : vector<16x256xf32>
      %18 = arith.truncf %17 : vector<16x256xf32> to vector<16x256xbf16>
      %c0_15 = arith.constant 0 : index
      %c0_16 = arith.constant 0 : index
      %19 = vector.load %arg6[%c0_15, %c0_16] : memref<16x256xbf16, #tpu.memory_space<vmem>>, vector<16x256xbf16>
      tpu.vector_store %arg6[%c0_15, %c0_16], %18 {strides = array<i32>} : memref<16x256xbf16, #tpu.memory_space<vmem>>, vector<16x256xbf16>,
    } else {
    }
    return
  }
  func.func @transform_0(%arg0: i32, %arg1: i32, %arg2: i32) -> (i32, i32) {
    %c0_i32 = arith.constant 0 : i32
    return %arg0, %arg2 : i32, i32
  }
  func.func @transform_1(%arg0: i32, %arg1: i32, %arg2: i32) -> (i32, i32) {
    %c0_i32 = arith.constant 0 : i32
    return %arg2, %arg1 : i32, i32
  }
  func.func @transform_2(%arg0: i32, %arg1: i32, %arg2: i32) -> (i32, i32) {
    %c0_i32 = arith.constant 0 : i32
    %c0_i32_0 = arith.constant 0 : i32
    return %c0_i32, %arg1 : i32, i32
  }
  func.func @transform_3(%arg0: i32, %arg1: i32, %arg2: i32) -> (i32, i32) {
    %c0_i32 = arith.constant 0 : i32
    return %arg0, %arg1 : i32, i32
  }
}

module attributes {stable_mosaic.version = 11 : i64} {
  func.func @_fused_matmul_kernel(%arg0: i32, %arg1: i32, %arg2: i32, %arg3: memref<32x256xbf16, #tpu.memory_space<vmem>>, %arg4: memref<256x128xbf16, #tpu.memory_space<vmem>>, %arg5: memref<1x128xf32, #tpu.memory_space<vmem>>, %arg6: memref<32x128xbf16, #tpu.memory_space<vmem>>, %arg7: memref<32x128xf32, #tpu.memory_space<vmem>>) attributes {dimension_semantics = [#tpu.dimension_semantics<parallel>, #tpu.dimension_semantics<parallel>, #tpu.dimension_semantics<arbitrary>], iteration_bounds = array<i64: 1, 1, 1>, scalar_prefetch = 0 : i64, scratch_operands = 1 : i64, tpu.core_type = #tpu.core_type<tc>, window_params = [{transform_indices = @transform_0, window_bounds = array<i64: 32, 256>}, {transform_indices = @transform_1, window_bounds = array<i64: 256, 128>}, {transform_indices = @transform_2, window_bounds = array<i64: 1, 128>}, {transform_indices = @transform_3, window_bounds = array<i64: 32, 128>}]} {
    %c0_i32 = arith.constant 0 : i32
    %0 = arith.cmpi eq, %arg2, %c0_i32 : i32
    %1 = arith.extui %0 : i1 to i32
    %c0_i32_0 = arith.constant 0 : i32
    %2 = arith.cmpi ne, %1, %c0_i32_0 : i32
    scf.if %2 {
      %cst_10 = arith.constant 0.000000e+00 : f32
      %12 = vector.broadcast %cst_10 : f32 to vector<32x128xf32>
      %c0_11 = arith.constant 0 : index
      %c0_12 = arith.constant 0 : index
      %13 = vector.load %arg7[%c0_11, %c0_12] : memref<32x128xf32, #tpu.memory_space<vmem>>, vector<32x128xf32>
      tpu.vector_store %arg7[%c0_11, %c0_12], %12 {strides = array<i32>} : memref<32x128xf32, #tpu.memory_space<vmem>>, vector<32x128xf32>,
    } else {
    }
    %c0 = arith.constant 0 : index
    %c0_1 = arith.constant 0 : index
    %3 = vector.load %arg7[%c0, %c0_1] : memref<32x128xf32, #tpu.memory_space<vmem>>, vector<32x128xf32>
    %c0_2 = arith.constant 0 : index
    %c0_3 = arith.constant 0 : index
    %4 = vector.load %arg3[%c0_2, %c0_3] : memref<32x256xbf16, #tpu.memory_space<vmem>>, vector<32x256xbf16>
    %c0_4 = arith.constant 0 : index
    %c0_5 = arith.constant 0 : index
    %5 = vector.load %arg4[%c0_4, %c0_5] : memref<256x128xbf16, #tpu.memory_space<vmem>>, vector<256x128xbf16>
    %cst = arith.constant dense<0.000000e+00> : vector<32x128xf32>
    %6 = tpu.matmul %4, %5, %cst {dimension_numbers = #tpu.dot_dimension_numbers<[1], [0], [0], [1], [0, 0, 1, 1], [], []>} : vector<32x256xbf16>, vector<256x128xbf16>, vector<32x128xf32> -> vector<32x128xf32>
    %7 = arith.addf %3, %6 : vector<32x128xf32>
    %c0_6 = arith.constant 0 : index
    %c0_7 = arith.constant 0 : index
    %8 = vector.load %arg7[%c0_6, %c0_7] : memref<32x128xf32, #tpu.memory_space<vmem>>, vector<32x128xf32>
    tpu.vector_store %arg7[%c0_6, %c0_7], %7 {strides = array<i32>} : memref<32x128xf32, #tpu.memory_space<vmem>>, vector<32x128xf32>,
    %c0_i32_8 = arith.constant 0 : i32
    %9 = arith.cmpi eq, %arg2, %c0_i32_8 : i32
    %10 = arith.extui %9 : i1 to i32
    %c0_i32_9 = arith.constant 0 : i32
    %11 = arith.cmpi ne, %10, %c0_i32_9 : i32
    scf.if %11 {
      %c0_10 = arith.constant 0 : index
      %c0_11 = arith.constant 0 : index
      %12 = vector.load %arg7[%c0_10, %c0_11] : memref<32x128xf32, #tpu.memory_space<vmem>>, vector<32x128xf32>
      %c0_12 = arith.constant 0 : index
      %c0_13 = arith.constant 0 : index
      %13 = vector.load %arg5[%c0_12, %c0_13] : memref<1x128xf32, #tpu.memory_space<vmem>>, vector<1x128xf32>
      %14 = vector.broadcast %13 : vector<1x128xf32> to vector<32x128xf32>
      %15 = arith.addf %12, %14 : vector<32x128xf32>
      %cst_14 = arith.constant 0.000000e+00 : f32
      %16 = vector.broadcast %cst_14 : f32 to vector<32x128xf32>
      %17 = arith.maximumf %15, %16 : vector<32x128xf32>
      %18 = arith.truncf %17 : vector<32x128xf32> to vector<32x128xbf16>
      %c0_15 = arith.constant 0 : index
      %c0_16 = arith.constant 0 : index
      %19 = vector.load %arg6[%c0_15, %c0_16] : memref<32x128xbf16, #tpu.memory_space<vmem>>, vector<32x128xbf16>
      tpu.vector_store %arg6[%c0_15, %c0_16], %18 {strides = array<i32>} : memref<32x128xbf16, #tpu.memory_space<vmem>>, vector<32x128xbf16>,
    } else {
    }
    return
  }
  func.func @transform_0(%arg0: i32, %arg1: i32, %arg2: i32) -> (i32, i32) {
    %c0_i32 = arith.constant 0 : i32
    return %arg0, %arg2 : i32, i32
  }
  func.func @transform_1(%arg0: i32, %arg1: i32, %arg2: i32) -> (i32, i32) {
    %c0_i32 = arith.constant 0 : i32
    return %arg2, %arg1 : i32, i32
  }
  func.func @transform_2(%arg0: i32, %arg1: i32, %arg2: i32) -> (i32, i32) {
    %c0_i32 = arith.constant 0 : i32
    %c0_i32_0 = arith.constant 0 : i32
    return %c0_i32, %arg1 : i32, i32
  }
  func.func @transform_3(%arg0: i32, %arg1: i32, %arg2: i32) -> (i32, i32) {
    %c0_i32 = arith.constant 0 : i32
    return %arg0, %arg1 : i32, i32
  }
}

module attributes {stable_mosaic.version = 11 : i64} {
  func.func @_fused_matmul_kernel(%arg0: i32, %arg1: i32, %arg2: i32, %arg3: memref<128x128xbf16, #tpu.memory_space<vmem>>, %arg4: memref<128x128xbf16, #tpu.memory_space<vmem>>, %arg5: memref<1x128xf32, #tpu.memory_space<vmem>>, %arg6: memref<128x128xf32, #tpu.memory_space<vmem>>, %arg7: memref<128x128xf32, #tpu.memory_space<vmem>>) attributes {dimension_semantics = [#tpu.dimension_semantics<parallel>, #tpu.dimension_semantics<parallel>, #tpu.dimension_semantics<arbitrary>], iteration_bounds = array<i64: 1, 1, 1>, scalar_prefetch = 0 : i64, scratch_operands = 1 : i64, tpu.core_type = #tpu.core_type<tc>, window_params = [{transform_indices = @transform_0, window_bounds = array<i64: 128, 128>}, {transform_indices = @transform_1, window_bounds = array<i64: 128, 128>}, {transform_indices = @transform_2, window_bounds = array<i64: 1, 128>}, {transform_indices = @transform_3, window_bounds = array<i64: 128, 128>}]} {
    %c0_i32 = arith.constant 0 : i32
    %0 = arith.cmpi eq, %arg2, %c0_i32 : i32
    %1 = arith.extui %0 : i1 to i32
    %c0_i32_0 = arith.constant 0 : i32
    %2 = arith.cmpi ne, %1, %c0_i32_0 : i32
    scf.if %2 {
      %cst_10 = arith.constant 0.000000e+00 : f32
      %12 = vector.broadcast %cst_10 : f32 to vector<128x128xf32>
      %c0_11 = arith.constant 0 : index
      %c0_12 = arith.constant 0 : index
      %13 = vector.load %arg7[%c0_11, %c0_12] : memref<128x128xf32, #tpu.memory_space<vmem>>, vector<128x128xf32>
      tpu.vector_store %arg7[%c0_11, %c0_12], %12 {strides = array<i32>} : memref<128x128xf32, #tpu.memory_space<vmem>>, vector<128x128xf32>,
    } else {
    }
    %c0 = arith.constant 0 : index
    %c0_1 = arith.constant 0 : index
    %3 = vector.load %arg7[%c0, %c0_1] : memref<128x128xf32, #tpu.memory_space<vmem>>, vector<128x128xf32>
    %c0_2 = arith.constant 0 : index
    %c0_3 = arith.constant 0 : index
    %4 = vector.load %arg3[%c0_2, %c0_3] : memref<128x128xbf16, #tpu.memory_space<vmem>>, vector<128x128xbf16>
    %c0_4 = arith.constant 0 : index
    %c0_5 = arith.constant 0 : index
    %5 = vector.load %arg4[%c0_4, %c0_5] : memref<128x128xbf16, #tpu.memory_space<vmem>>, vector<128x128xbf16>
    %cst = arith.constant dense<0.000000e+00> : vector<128x128xf32>
    %6 = tpu.matmul %4, %5, %cst {dimension_numbers = #tpu.dot_dimension_numbers<[1], [0], [0], [1], [0, 0, 1, 1], [], []>} : vector<128x128xbf16>, vector<128x128xbf16>, vector<128x128xf32> -> vector<128x128xf32>
    %7 = arith.addf %3, %6 : vector<128x128xf32>
    %c0_6 = arith.constant 0 : index
    %c0_7 = arith.constant 0 : index
    %8 = vector.load %arg7[%c0_6, %c0_7] : memref<128x128xf32, #tpu.memory_space<vmem>>, vector<128x128xf32>
    tpu.vector_store %arg7[%c0_6, %c0_7], %7 {strides = array<i32>} : memref<128x128xf32, #tpu.memory_space<vmem>>, vector<128x128xf32>,
    %c0_i32_8 = arith.constant 0 : i32
    %9 = arith.cmpi eq, %arg2, %c0_i32_8 : i32
    %10 = arith.extui %9 : i1 to i32
    %c0_i32_9 = arith.constant 0 : i32
    %11 = arith.cmpi ne, %10, %c0_i32_9 : i32
    scf.if %11 {
      %c0_10 = arith.constant 0 : index
      %c0_11 = arith.constant 0 : index
      %12 = vector.load %arg7[%c0_10, %c0_11] : memref<128x128xf32, #tpu.memory_space<vmem>>, vector<128x128xf32>
      %c0_12 = arith.constant 0 : index
      %c0_13 = arith.constant 0 : index
      %13 = vector.load %arg5[%c0_12, %c0_13] : memref<1x128xf32, #tpu.memory_space<vmem>>, vector<1x128xf32>
      %14 = vector.broadcast %13 : vector<1x128xf32> to vector<128x128xf32>
      %15 = arith.addf %12, %14 : vector<128x128xf32>
      %cst_14 = arith.constant 5.000000e-01 : f32
      %16 = vector.broadcast %cst_14 : f32 to vector<128x128xf32>
      %17 = arith.mulf %16, %15 : vector<128x128xf32>
      %18 = math.tanh %17 : vector<128x128xf32>
      %cst_15 = arith.constant 1.000000e+00 : f32
      %19 = vector.broadcast %cst_15 : f32 to vector<128x128xf32>
      %20 = arith.addf %18, %19 : vector<128x128xf32>
      %cst_16 = arith.constant 5.000000e-01 : f32
      %21 = vector.broadcast %cst_16 : f32 to vector<128x128xf32>
      %22 = arith.mulf %21, %20 : vector<128x128xf32>
      %c0_17 = arith.constant 0 : index
      %c0_18 = arith.constant 0 : index
      %23 = vector.load %arg6[%c0_17, %c0_18] : memref<128x128xf32, #tpu.memory_space<vmem>>, vector<128x128xf32>
      tpu.vector_store %arg6[%c0_17, %c0_18], %22 {strides = array<i32>} : memref<128x128xf32, #tpu.memory_space<vmem>>, vector<128x128xf32>,
    } else {
    }
    return
  }
  func.func @transform_0(%arg0: i32, %arg1: i32, %arg2: i32) -> (i32, i32) {
    %c0_i32 = arith.constant 0 : i32
    return %arg0, %arg2 : i32, i32
  }
  func.func @transform_1(%arg0: i32, %arg1: i32, %arg2: i32) -> (i32, i32) {
    %c0_i32 = arith.constant 0 : i32
    return %arg2, %arg1 : i32, i32
  }
  func.func @transform_2(%arg0: i32, %arg1: i32, %arg2: i32) -> (i32, i32) {
    %c0_i32 = arith.constant 0 : i32
    %c0_i32_0 = arith.constant 0 : i32
    return %c0_i32, %arg1 : i32, i32
  }
  func.func @transform_3(%arg0: i32, %arg1: i32, %arg2: i32) -> (i32, i32) {
    %c0_i32 = arith.constant 0 : i32
    return %arg0, %arg1 : i32, i32
  }
}

</mosaic_0001>

<bundles_post_ra>
// kernel: conv_vae_forward.6
= control target key start
LH: loop header
LB: loop body
LE: loop exit
PB: predicated region body
PF: predicated region fallthrough
CT: control target
= control target key end

     0   :  { %s597_s1 = inlined_call_operand.vmem [shape: bf16[128,128], index: 1, kind: input, shape index: {}]   ;;  %s598_s2 = inlined_call_operand.vmem [shape: f32[1,128], index: 2, kind: input, shape index: {}]   ;;  %s599_s0 = inlined_call_operand.vmem [shape: bf16[128,128], index: 0, kind: input, shape index: {}]   ;;  %s600_s3 = inlined_call_operand.vmem [shape: bf16[128,128], index: 3, kind: output, shape index: {}]  }
   0x1   :  { %v429_v0 = vld [vmem:[%s597_s1 + $0x38] sm:$0xff]  ;;  %v428_v1 = vld [vmem:[%s597_s1 + $0x30] sm:$0xff]  ;;  %v427_v2 = vld [vmem:[%s597_s1 + $0x28] sm:$0xff] }
   0x2   :  { %178 = vmatpush.bf16.msra.mxu0 %v429_v0  ;;  %477 = vmatpush.bf16.msra.mxu1 %v429_v0  ;;  %v426_v3 = vld [vmem:[%s597_s1 + $0x20] sm:$0xff]  ;;  %v425_v4 = vld [vmem:[%s597_s1 + $0x18] sm:$0xff]  ;;  %v424_v5 = vld [vmem:[%s597_s1 + $0x10] sm:$0xff] }
   0x3   :  { %478 = vmatpush.bf16.msra.mxu2 %v429_v0  ;;  %479 = vmatpush.bf16.msra.mxu3 %v429_v0  ;;  %v423_v6 = vld [vmem:[%s597_s1 + $0x8] sm:$0xff]  ;;  %v422_v7 = vld [vmem:[%s597_s1] sm:$0xff]  ;;  %v416_v9 = vld [vmem:[%s599_s0 + $0x10] sm:$0xff] }
   0x4   :  { %v414_v8 = vld [vmem:[%s599_s0] sm:$0xff]  ;;  %v420_v11 = vld [vmem:[%s599_s0 + $0x30] sm:$0xff]  ;;  %v415_v12 = vld [vmem:[%s599_s0 + $0x8] sm:$0xff] }
   0x5   :  { %v418_v10 = vld [vmem:[%s599_s0 + $0x20] sm:$0xff]  ;;  %v417_v13 = vld [vmem:[%s599_s0 + $0x18] sm:$0xff]  ;;  %v419_v14 = vld [vmem:[%s599_s0 + $0x28] sm:$0xff] }
   0x6   :  { %179 = vmatpush.bf16.msra.mxu0 %v428_v1  ;;  %480 = vmatpush.bf16.msra.mxu1 %v428_v1  ;;  %v421_v15 = vld [vmem:[%s599_s0 + $0x38] sm:$0xff]  ;;  %v501_v18 = vld [vmem:[%s598_s2] ss:$0 sm:$0xff] }
   0x7   :  { %481 = vmatpush.bf16.msra.mxu2 %v428_v1  ;;  %482 = vmatpush.bf16.msra.mxu3 %v428_v1 }
   0xa   :  { %180 = vmatpush.bf16.msra.mxu0 %v427_v2  ;;  %483 = vmatpush.bf16.msra.mxu1 %v427_v2 }
   0xb   :  { %484 = vmatpush.bf16.msra.mxu2 %v427_v2  ;;  %485 = vmatpush.bf16.msra.mxu3 %v427_v2 }
   0xe   :  { %181 = vmatpush.bf16.msra.mxu0 %v426_v3  ;;  %486 = vmatpush.bf16.msra.mxu1 %v426_v3 }
   0xf   :  { %487 = vmatpush.bf16.msra.mxu2 %v426_v3  ;;  %488 = vmatpush.bf16.msra.mxu3 %v426_v3 }
  0x12   :  { %182 = vmatpush.bf16.msra.mxu0 %v425_v4  ;;  %489 = vmatpush.bf16.msra.mxu1 %v425_v4 }
  0x13   :  { %490 = vmatpush.bf16.msra.mxu2 %v425_v4  ;;  %491 = vmatpush.bf16.msra.mxu3 %v425_v4 }
  0x16   :  { %183 = vmatpush.bf16.msra.mxu0 %v424_v5  ;;  %492 = vmatpush.bf16.msra.mxu1 %v424_v5 }
  0x17   :  { %493 = vmatpush.bf16.msra.mxu2 %v424_v5  ;;  %494 = vmatpush.bf16.msra.mxu3 %v424_v5 }
  0x1a   :  { %184 = vmatpush.bf16.msra.mxu0 %v423_v6  ;;  %495 = vmatpush.bf16.msra.mxu1 %v423_v6 }
  0x1b   :  { %496 = vmatpush.bf16.msra.mxu2 %v423_v6  ;;  %497 = vmatpush.bf16.msra.mxu3 %v423_v6 }
  0x1e   :  { %185 = vmatpush.bf16.msra.mxu0 %v422_v7  ;;  %498 = vmatpush.bf16.msra.mxu1 %v422_v7 }
  0x1f   :  { %499 = vmatpush.bf16.msra.mxu2 %v422_v7  ;;  %500 = vmatpush.bf16.msra.mxu3 %v422_v7 }
  0x21   :  { %186 = vmatmul.bf16.vlgmr.msra.gmra.mxu0 %v414_v8  ;;  %196 = vmatmul.bf16.vlgmr.msra.gmra.mxu1 %v416_v9 }
  0x22   :  { %206 = vmatmul.bf16.vlgmr.msra.gmra.mxu2 %v418_v10  ;;  %216 = vmatmul.bf16.vlgmr.msra.gmra.mxu3 %v420_v11 }
  0x31   :  { %191 = vmatmul.bf16.gmra.mxu0 %v415_v12  ;;  %201 = vmatmul.bf16.gmra.mxu1 %v417_v13 }
  0x32   :  { %211 = vmatmul.bf16.gmra.mxu2 %v419_v14  ;;  %221 = vmatmul.bf16.gmra.mxu3 %v421_v15 }
  0x9e   :  { %v187_v16 = vpop.f32.mrf.mxu0  ;;  %v197_v17 = vpop.f32.mrf.mxu1 }
  0x9f   :  { %v282_v19 = vadd.f32 %v501_v18, %v187_v16  ;;  %v286_v20 = vadd.f32 %v501_v18, %v197_v17 }
  0xa1   :  { %v298_v27 = vmax.f32 %v282_v19, 0.0  ;;  %v302_v28 = vmax.f32 %v286_v20, 0.0 }
  0xa5   :  { %v207_v21 = vpop.f32.mrf.mxu2  ;;  %v217_v22 = vpop.f32.mrf.mxu3 }
  0xa6   :  { %v189_v23 = vpop.f32.mrf.mxu0  ;;  %v199_v24 = vpop.f32.mrf.mxu1  ;;  %v290_v33 = vadd.f32 %v501_v18, %v207_v21  ;;  %v294_v34 = vadd.f32 %v501_v18, %v217_v22 }
  0xa7   :  { %v283_v25 = vadd.f32 %v501_v18, %v189_v23  ;;  %v287_v26 = vadd.f32 %v501_v18, %v199_v24 }
  0xa8   :  { %v306_v41 = vmax.f32 %v290_v33, 0.0  ;;  %v310_v42 = vmax.f32 %v294_v34, 0.0 }
  0xa9   :  { %v299_v29 = vmax.f32 %v283_v25, 0.0  ;;  %v303_v30 = vmax.f32 %v287_v26, 0.0 }
  0xab   :  { %v433_v31 = vpack.c.bf16 %v299_v29, %v298_v27  ;;  %v443_v32 = vpack.c.bf16 %v303_v30, %v302_v28 }
  0xad   :  { %434 = vst [vmem:[%s600_s3] sm:$0xff] %v433_v31   ;;  %v209_v35 = vpop.f32.mrf.mxu2  ;;  %v219_v36 = vpop.f32.mrf.mxu3 }
  0xae   :  { %471 = vst [vmem:[%s600_s3 + $0x10] sm:$0xff] %v443_v32   ;;  %v291_v37 = vadd.f32 %v501_v18, %v209_v35  ;;  %v295_v38 = vadd.f32 %v501_v18, %v219_v36  ;;  %v192_v39 = vpop.f32.mrf.mxu0  ;;  %v202_v40 = vpop.f32.mrf.mxu1 }
  0xaf   :  { %v284_v47 = vadd.f32 %v501_v18, %v192_v39  ;;  %v288_v48 = vadd.f32 %v501_v18, %v202_v40 }
  0xb0   :  { %v307_v43 = vmax.f32 %v291_v37, 0.0  ;;  %v311_v44 = vmax.f32 %v295_v38, 0.0 }
  0xb1   :  { %v300_v55 = vmax.f32 %v284_v47, 0.0  ;;  %v304_v56 = vmax.f32 %v288_v48, 0.0 }
  0xb2   :  { %v453_v45 = vpack.c.bf16 %v307_v43, %v306_v41  ;;  %v463_v46 = vpack.c.bf16 %v311_v44, %v310_v42 }
  0xb4   :  { %473 = vst [vmem:[%s600_s3 + $0x20] sm:$0xff] %v453_v45  }
  0xb5   :  { %475 = vst [vmem:[%s600_s3 + $0x30] sm:$0xff] %v463_v46   ;;  %v212_v49 = vpop.f32.mrf.mxu2  ;;  %v222_v50 = vpop.f32.mrf.mxu3 }
  0xb6   :  { %v194_v51 = vpop.f32.mrf.mxu0  ;;  %v204_v52 = vpop.f32.mrf.mxu1  ;;  %v292_v61 = vadd.f32 %v501_v18, %v212_v49  ;;  %v296_v62 = vadd.f32 %v501_v18, %v222_v50 }
  0xb7   :  { %v285_v53 = vadd.f32 %v501_v18, %v194_v51  ;;  %v289_v54 = vadd.f32 %v501_v18, %v204_v52 }
  0xb8   :  { %v308_v3 = vmax.f32 %v292_v61, 0.0  ;;  %v312_v4 = vmax.f32 %v296_v62, 0.0 }
  0xb9   :  { %v301_v57 = vmax.f32 %v285_v53, 0.0  ;;  %v305_v58 = vmax.f32 %v289_v54, 0.0 }
  0xbb   :  { %v438_v59 = vpack.c.bf16 %v301_v57, %v300_v55  ;;  %v448_v60 = vpack.c.bf16 %v305_v58, %v304_v56 }
  0xbd   :  { %470 = vst [vmem:[%s600_s3 + $0x8] sm:$0xff] %v438_v59   ;;  %v214_v63 = vpop.f32.mrf.mxu2  ;;  %v224_v0 = vpop.f32.mrf.mxu3 }
  0xbe   :  { %472 = vst [vmem:[%s600_s3 + $0x18] sm:$0xff] %v448_v60   ;;  %v293_v1 = vadd.f32 %v501_v18, %v214_v63  ;;  %v297_v2 = vadd.f32 %v501_v18, %v224_v0 }
  0xc0   :  { %v309_v5 = vmax.f32 %v293_v1, 0.0  ;;  %v313_v6 = vmax.f32 %v297_v2, 0.0 }
  0xc2   :  { %v458_v7 = vpack.c.bf16 %v309_v5, %v308_v3  ;;  %v468_v8 = vpack.c.bf16 %v313_v6, %v312_v4 }
  0xc4   :  { %474 = vst [vmem:[%s600_s3 + $0x28] sm:$0xff] %v458_v7  }
  0xc5   :  { %476 = vst [vmem:[%s600_s3 + $0x38] sm:$0xff] %v468_v8  }

// kernel: conv_vae_forward.7
= control target key start
LH: loop header
LB: loop body
LE: loop exit
PB: predicated region body
PF: predicated region fallthrough
CT: control target
= control target key end

     0   :  { %s293_s1 = inlined_call_operand.vmem [shape: bf16[128,128], index: 1, kind: input, shape index: {}]   ;;  %s294_s2 = inlined_call_operand.vmem [shape: f32[1,128], index: 2, kind: input, shape index: {}]   ;;  %s295_s0 = inlined_call_operand.vmem [shape: bf16[32,128], index: 0, kind: input, shape index: {}]   ;;  %s296_s3 = inlined_call_operand.vmem [shape: bf16[32,128], index: 3, kind: output, shape index: {}]  }
   0x1   :  { %v213_v0 = vld [vmem:[%s293_s1 + $0x38] sm:$0xff]  ;;  %v212_v1 = vld [vmem:[%s293_s1 + $0x30] sm:$0xff]  ;;  %v211_v2 = vld [vmem:[%s293_s1 + $0x28] sm:$0xff] }
   0x2   :  { %106 = vmatpush.bf16.msra.mxu0 %v213_v0  ;;  %225 = vmatpush.bf16.msra.mxu1 %v213_v0  ;;  %v210_v3 = vld [vmem:[%s293_s1 + $0x20] sm:$0xff]  ;;  %v209_v4 = vld [vmem:[%s293_s1 + $0x18] sm:$0xff]  ;;  %v208_v5 = vld [vmem:[%s293_s1 + $0x10] sm:$0xff] }
   0x3   :  { %v207_v6 = vld [vmem:[%s293_s1 + $0x8] sm:$0xff]  ;;  %v206_v7 = vld [vmem:[%s293_s1] sm:$0xff] }
   0x4   :  { %v204_v8 = vld [vmem:[%s295_s0] sm:$0xff]  ;;  %v205_v9 = vld [vmem:[%s295_s0 + $0x8] sm:$0xff] }
   0x5   :  { %v233_v12 = vld [vmem:[%s294_s2] ss:$0 sm:$0xff] }
   0x6   :  { %107 = vmatpush.bf16.msra.mxu0 %v212_v1  ;;  %226 = vmatpush.bf16.msra.mxu1 %v212_v1 }
   0xa   :  { %108 = vmatpush.bf16.msra.mxu0 %v211_v2  ;;  %227 = vmatpush.bf16.msra.mxu1 %v211_v2 }
   0xe   :  { %109 = vmatpush.bf16.msra.mxu0 %v210_v3  ;;  %228 = vmatpush.bf16.msra.mxu1 %v210_v3 }
  0x12   :  { %110 = vmatpush.bf16.msra.mxu0 %v209_v4  ;;  %229 = vmatpush.bf16.msra.mxu1 %v209_v4 }
  0x16   :  { %111 = vmatpush.bf16.msra.mxu0 %v208_v5  ;;  %230 = vmatpush.bf16.msra.mxu1 %v208_v5 }
  0x1a   :  { %112 = vmatpush.bf16.msra.mxu0 %v207_v6  ;;  %231 = vmatpush.bf16.msra.mxu1 %v207_v6 }
  0x1e   :  { %113 = vmatpush.bf16.msra.mxu0 %v206_v7  ;;  %232 = vmatpush.bf16.msra.mxu1 %v206_v7 }
  0x21   :  { %114 = vmatmul.bf16.vlgmr.msra.gmra.mxu0 %v204_v8  ;;  %119 = vmatmul.bf16.vlgmr.msra.gmra.mxu1 %v205_v9 }
  0x9e   :  { %v115_v10 = vpop.f32.mrf.mxu0  ;;  %v120_v11 = vpop.f32.mrf.mxu1 }
  0x9f   :  { %v144_v13 = vadd.f32 %v233_v12, %v115_v10  ;;  %v146_v14 = vadd.f32 %v233_v12, %v120_v11 }
  0xa1   :  { %v148_v19 = vmax.f32 %v144_v13, 0.0  ;;  %v150_v20 = vmax.f32 %v146_v14, 0.0 }
  0xa6   :  { %v117_v15 = vpop.f32.mrf.mxu0  ;;  %v122_v16 = vpop.f32.mrf.mxu1 }
  0xa7   :  { %v145_v17 = vadd.f32 %v233_v12, %v117_v15  ;;  %v147_v18 = vadd.f32 %v233_v12, %v122_v16 }
  0xa9   :  { %v149_v21 = vmax.f32 %v145_v17, 0.0  ;;  %v151_v22 = vmax.f32 %v147_v18, 0.0 }
  0xab   :  { %v217_v23 = vpack.c.bf16 %v149_v21, %v148_v19  ;;  %v222_v24 = vpack.c.bf16 %v151_v22, %v150_v20 }
  0xad   :  { %218 = vst [vmem:[%s296_s3] sm:$0xff] %v217_v23  }
  0xae   :  { %224 = vst [vmem:[%s296_s3 + $0x8] sm:$0xff] %v222_v24  }

// kernel: conv_vae_forward.9
= control target key start
LH: loop header
LB: loop body
LE: loop exit
PB: predicated region body
PF: predicated region fallthrough
CT: control target
= control target key end

     0   :  { %s408_s1 = inlined_call_operand.vmem [shape: bf16[128,256], index: 1, kind: input, shape index: {}]   ;;  %s409_s0 = inlined_call_operand.vmem [shape: bf16[16,128], index: 0, kind: input, shape index: {}]   ;;  %s410_s2 = inlined_call_operand.vmem [shape: f32[1,256], index: 2, kind: input, shape index: {}]   ;;  %s411_s3 = inlined_call_operand.vmem [shape: bf16[16,256], index: 3, kind: output, shape index: {}]  }
   0x1   :  { %v257_v0 = vld [vmem:[%s408_s1 + $0x70] sm:$0xf]  ;;  %v279_v1 = vld [vmem:[%s408_s1 + $0x74] sm:$0xf0]  ;;  %v278_v2 = vld [vmem:[%s408_s1 + $0x74] sm:$0xf] }
   0x2   :  { %v258_v3 = vor.u32 %v279_v1, %v257_v0  ;;  %v259_v4 = vld [vmem:[%s408_s1 + $0x78] sm:$0xf0]  ;;  %v249_v5 = vld [vmem:[%s408_s1 + $0x60] sm:$0xf]  ;;  %v277_v6 = vld [vmem:[%s408_s1 + $0x64] sm:$0xf0] }
   0x3   :  { %v262_v7 = vor.u32 %v278_v2, %v259_v4  ;;  %v276_v8 = vld [vmem:[%s408_s1 + $0x64] sm:$0xf]  ;;  %v251_v9 = vld [vmem:[%s408_s1 + $0x68] sm:$0xf0]  ;;  %v250_v10 = vor.u32 %v277_v6, %v249_v5  ;;  %v241_v12 = vld [vmem:[%s408_s1 + $0x50] sm:$0xf] }
   0x4   :  { %130 = vmatpush.bf16.msra.mxu0 %v258_v3  ;;  %v254_v11 = vor.u32 %v276_v8, %v251_v9  ;;  %v275_v13 = vld [vmem:[%s408_s1 + $0x54] sm:$0xf0]  ;;  %v274_v14 = vld [vmem:[%s408_s1 + $0x54] sm:$0xf]  ;;  %v243_v15 = vld [vmem:[%s408_s1 + $0x58] sm:$0xf0] }
   0x5   :  { %144 = vmatpush.bf16.msra.mxu1 %v262_v7  ;;  %v242_v16 = vor.u32 %v275_v13, %v241_v12  ;;  %v246_v17 = vor.u32 %v274_v14, %v243_v15  ;;  %v233_v18 = vld [vmem:[%s408_s1 + $0x40] sm:$0xf]  ;;  %v273_v19 = vld [vmem:[%s408_s1 + $0x44] sm:$0xf0]  ;;  %v272_v20 = vld [vmem:[%s408_s1 + $0x44] sm:$0xf] }
   0x6   :  { %v235_v21 = vld [vmem:[%s408_s1 + $0x48] sm:$0xf0]  ;;  %v234_v22 = vor.u32 %v273_v19, %v233_v18  ;;  %v225_v24 = vld [vmem:[%s408_s1 + $0x30] sm:$0xf]  ;;  %v271_v25 = vld [vmem:[%s408_s1 + $0x34] sm:$0xf0] }
   0x7   :  { %v238_v23 = vor.u32 %v272_v20, %v235_v21  ;;  %v270_v26 = vld [vmem:[%s408_s1 + $0x34] sm:$0xf]  ;;  %v227_v27 = vld [vmem:[%s408_s1 + $0x38] sm:$0xf0]  ;;  %v226_v28 = vor.u32 %v271_v25, %v225_v24  ;;  %v217_v30 = vld [vmem:[%s408_s1 + $0x20] sm:$0xf] }
   0x8   :  { %131 = vmatpush.bf16.msra.mxu0 %v250_v10  ;;  %v230_v29 = vor.u32 %v270_v26, %v227_v27  ;;  %v269_v31 = vld [vmem:[%s408_s1 + $0x24] sm:$0xf0]  ;;  %v268_v32 = vld [vmem:[%s408_s1 + $0x24] sm:$0xf]  ;;  %v219_v33 = vld [vmem:[%s408_s1 + $0x28] sm:$0xf0] }
   0x9   :  { %145 = vmatpush.bf16.msra.mxu1 %v254_v11  ;;  %v218_v34 = vor.u32 %v269_v31, %v217_v30  ;;  %v222_v35 = vor.u32 %v268_v32, %v219_v33  ;;  %v209_v36 = vld [vmem:[%s408_s1 + $0x10] sm:$0xf]  ;;  %v267_v37 = vld [vmem:[%s408_s1 + $0x14] sm:$0xf0]  ;;  %v266_v38 = vld [vmem:[%s408_s1 + $0x14] sm:$0xf] }
   0xa   :  { %v211_v39 = vld [vmem:[%s408_s1 + $0x18] sm:$0xf0]  ;;  %v210_v40 = vor.u32 %v267_v37, %v209_v36  ;;  %v201_v42 = vld [vmem:[%s408_s1] sm:$0xf]  ;;  %v265_v43 = vld [vmem:[%s408_s1 + $0x4] sm:$0xf0] }
   0xb   :  { %v214_v41 = vor.u32 %v266_v38, %v211_v39  ;;  %v264_v44 = vld [vmem:[%s408_s1 + $0x4] sm:$0xf]  ;;  %v203_v45 = vld [vmem:[%s408_s1 + $0x8] sm:$0xf0]  ;;  %v202_v46 = vor.u32 %v265_v43, %v201_v42  ;;  %v173_v49 = vld [vmem:[%s410_s2] sm:$0x3] }
   0xc   :  { %132 = vmatpush.bf16.msra.mxu0 %v242_v16  ;;  %v206_v47 = vor.u32 %v264_v44, %v203_v45  ;;  %v263_v48 = vld [vmem:[%s409_s0] sm:$0xff]  ;;  %v175_v50 = vperm.slane %v173_v49, 0  ;;  %v176_v51 = vperm.slane %v173_v49, 1 }
   0xd   :  { %146 = vmatpush.bf16.msra.mxu1 %v246_v17 }
  0x10   :  { %133 = vmatpush.bf16.msra.mxu0 %v234_v22 }
  0x11   :  { %147 = vmatpush.bf16.msra.mxu1 %v238_v23 }
  0x14   :  { %134 = vmatpush.bf16.msra.mxu0 %v226_v28 }
  0x15   :  { %148 = vmatpush.bf16.msra.mxu1 %v230_v29 }
  0x18   :  { %135 = vmatpush.bf16.msra.mxu0 %v218_v34 }
  0x19   :  { %149 = vmatpush.bf16.msra.mxu1 %v222_v35 }
  0x1c   :  { %136 = vmatpush.bf16.msra.mxu0 %v210_v40 }
  0x1d   :  { %150 = vmatpush.bf16.msra.mxu1 %v214_v41 }
  0x20   :  { %137 = vmatpush.bf16.msra.mxu0 %v202_v46 }
  0x21   :  { %151 = vmatpush.bf16.msra.mxu1 %v206_v47 }
  0x23   :  { %138 = vmatmul.bf16.vlgmr.msra.gmra.mxu0 %v263_v48 }
  0x24   :  { %152 = vmatmul.bf16.vlgmr.msra.gmra.mxu1 %v263_v48 }
  0xa0   :  { %v139_v52 = vpop.f32.mrf.mxu0 }
  0xa1   :  { %v179_v53 = vadd.f32 %v175_v50, %v139_v52  ;;  %v153_v54 = vpop.f32.mrf.mxu1 }
  0xa2   :  { %v180_v55 = vadd.f32 %v176_v51, %v153_v54 }
  0xa3   :  { %v183_v56 = vmax.f32 %v179_v53, 0.0 }
  0xa4   :  { %v184_v57 = vmax.f32 %v180_v55, 0.0 }
  0xa6   :  { %v187_v58 = vpack.c.bf16 %v184_v57, %v183_v56 }
  0xa8   :  { %189 = vst [vmem:[%s411_s3] sm:$0xff] %v187_v58  ;;  %v141_v59 = vpop.f32.mrf.mxu0 }
  0xa9   :  { %v181_v60 = vadd.f32 %v175_v50, %v141_v59  ;;  %v155_v61 = vpop.f32.mrf.mxu1 }
  0xaa   :  { %v182_v62 = vadd.f32 %v176_v51, %v155_v61 }
  0xab   :  { %v185_v63 = vmax.f32 %v181_v60, 0.0 }
  0xac   :  { %v186_v0 = vmax.f32 %v182_v62, 0.0 }
  0xae   :  { %v188_v1 = vpack.c.bf16 %v186_v0, %v185_v63 }
  0xb0   :  { %190 = vst [vmem:[%s411_s3 + $0x8] sm:$0xff] %v188_v1 }

// kernel: conv_vae_forward.8
= control target key start
LH: loop header
LB: loop body
LE: loop exit
PB: predicated region body
PF: predicated region fallthrough
CT: control target
= control target key end

     0   :  { %s391_s1 = inlined_call_operand.vmem [shape: bf16[256,128], index: 1, kind: input, shape index: {}]   ;;  %s392_s0 = inlined_call_operand.vmem [shape: bf16[16,256], index: 0, kind: input, shape index: {}]   ;;  %s393_s2 = inlined_call_operand.vmem [shape: f32[1,128], index: 2, kind: input, shape index: {}]   ;;  %s394_s3 = inlined_call_operand.vmem [shape: f32[16,128], index: 3, kind: output, shape index: {}]  }
   0x1   :  { %v292_v0 = vld [vmem:[%s391_s1 + $0x38] sm:$0xff]  ;;  %v291_v2 = vld [vmem:[%s391_s1 + $0x30] sm:$0xff]  ;;  %v290_v4 = vld [vmem:[%s391_s1 + $0x28] sm:$0xff] }
   0x2   :  { %v300_v1 = vld [vmem:[%s391_s1 + $0x78] sm:$0xff]  ;;  %162 = vmatpush.bf16.msra.mxu0 %v292_v0  ;;  %v299_v3 = vld [vmem:[%s391_s1 + $0x70] sm:$0xff]  ;;  %v298_v5 = vld [vmem:[%s391_s1 + $0x68] sm:$0xff] }
   0x3   :  { %176 = vmatpush.bf16.msra.mxu1 %v300_v1  ;;  %v289_v6 = vld [vmem:[%s391_s1 + $0x20] sm:$0xff]  ;;  %v288_v8 = vld [vmem:[%s391_s1 + $0x18] sm:$0xff]  ;;  %v287_v10 = vld [vmem:[%s391_s1 + $0x10] sm:$0xff] }
   0x4   :  { %v297_v7 = vld [vmem:[%s391_s1 + $0x60] sm:$0xff]  ;;  %v296_v9 = vld [vmem:[%s391_s1 + $0x58] sm:$0xff]  ;;  %v295_v11 = vld [vmem:[%s391_s1 + $0x50] sm:$0xff] }
   0x5   :  { %v286_v12 = vld [vmem:[%s391_s1 + $0x8] sm:$0xff]  ;;  %v285_v14 = vld [vmem:[%s391_s1] sm:$0xff] }
   0x6   :  { %163 = vmatpush.bf16.msra.mxu0 %v291_v2  ;;  %v294_v13 = vld [vmem:[%s391_s1 + $0x48] sm:$0xff]  ;;  %v293_v15 = vld [vmem:[%s391_s1 + $0x40] sm:$0xff] }
   0x7   :  { %177 = vmatpush.bf16.msra.mxu1 %v299_v3  ;;  %v213_v16 = vld [vmem:[%s392_s0] sm:$0xf]  ;;  %v284_v17 = vld [vmem:[%s392_s0 + $0x4] sm:$0xf0]  ;;  %v283_v18 = vld [vmem:[%s392_s0 + $0x4] sm:$0xf] }
   0x8   :  { %v215_v19 = vld [vmem:[%s392_s0 + $0x8] sm:$0xf0]  ;;  %v214_v20 = vor.u32 %v284_v17, %v213_v16  ;;  %v301_v22 = vld [vmem:[%s393_s2] ss:$0 sm:$0xff] }
   0x9   :  { %v218_v21 = vor.u32 %v283_v18, %v215_v19 }
   0xa   :  { %164 = vmatpush.bf16.msra.mxu0 %v290_v4 }
   0xb   :  { %178 = vmatpush.bf16.msra.mxu1 %v298_v5 }
   0xe   :  { %165 = vmatpush.bf16.msra.mxu0 %v289_v6 }
   0xf   :  { %179 = vmatpush.bf16.msra.mxu1 %v297_v7 }
  0x12   :  { %166 = vmatpush.bf16.msra.mxu0 %v288_v8 }
  0x13   :  { %180 = vmatpush.bf16.msra.mxu1 %v296_v9 }
  0x16   :  { %167 = vmatpush.bf16.msra.mxu0 %v287_v10 }
  0x17   :  { %181 = vmatpush.bf16.msra.mxu1 %v295_v11 }
  0x1a   :  { %168 = vmatpush.bf16.msra.mxu0 %v286_v12 }
  0x1b   :  { %182 = vmatpush.bf16.msra.mxu1 %v294_v13 }
  0x1e   :  { %169 = vmatpush.bf16.msra.mxu0 %v285_v14 }
  0x1f   :  { %183 = vmatpush.bf16.msra.mxu1 %v293_v15 }
  0x21   :  { %170 = vmatmul.bf16.vlgmr.msra.gmra.mxu0 %v214_v20 }
  0x22   :  { %184 = vmatmul.bf16.vlgmr.msra.gmra.mxu1 %v218_v21 }
  0x9e   :  { %v171_v23 = vpop.f32.mrf.mxu0 }
  0x9f   :  { %v185_v24 = vpop.f32.mrf.mxu1 }
  0xa0   :  { %v186_v25 = vadd.f32 %v185_v24, %v171_v23 }
  0xa2   :  { %v203_v26 = vadd.f32 %v301_v22, %v186_v25 }
  0xa4   :  { %205 = vst [vmem:[%s394_s3] sm:$0xff] %v203_v26 }
  0xa6   :  { %v173_v27 = vpop.f32.mrf.mxu0 }
  0xa7   :  { %v187_v28 = vpop.f32.mrf.mxu1 }
  0xa8   :  { %v188_v29 = vadd.f32 %v187_v28, %v173_v27 }
  0xaa   :  { %v204_v30 = vadd.f32 %v301_v22, %v188_v29 }
  0xac   :  { %206 = vst [vmem:[%s394_s3 + $0x8] sm:$0xff] %v204_v30 }

// kernel: conv_vae_forward.10
= control target key start
LH: loop header
LB: loop body
LE: loop exit
PB: predicated region body
PF: predicated region fallthrough
CT: control target
= control target key end

     0   :  { %s484_s1 = inlined_call_operand.vmem [shape: bf16[256,128], index: 1, kind: input, shape index: {}]   ;;  %s485_s0 = inlined_call_operand.vmem [shape: bf16[32,256], index: 0, kind: input, shape index: {}]   ;;  %s486_s2 = inlined_call_operand.vmem [shape: f32[1,128], index: 2, kind: input, shape index: {}]   ;;  %s487_s3 = inlined_call_operand.vmem [shape: bf16[32,128], index: 3, kind: output, shape index: {}]  }
   0x1   :  { %v346_v0 = vld [vmem:[%s484_s1 + $0x38] sm:$0xff]  ;;  %v345_v2 = vld [vmem:[%s484_s1 + $0x30] sm:$0xff]  ;;  %v344_v4 = vld [vmem:[%s484_s1 + $0x28] sm:$0xff] }
   0x2   :  { %v354_v1 = vld [vmem:[%s484_s1 + $0x78] sm:$0xff]  ;;  %178 = vmatpush.bf16.msra.mxu0 %v346_v0  ;;  %366 = vmatpush.bf16.msra.mxu2 %v346_v0  ;;  %v353_v3 = vld [vmem:[%s484_s1 + $0x70] sm:$0xff]  ;;  %v352_v5 = vld [vmem:[%s484_s1 + $0x68] sm:$0xff] }
   0x3   :  { %197 = vmatpush.bf16.msra.mxu1 %v354_v1  ;;  %374 = vmatpush.bf16.msra.mxu3 %v354_v1  ;;  %v343_v6 = vld [vmem:[%s484_s1 + $0x20] sm:$0xff]  ;;  %v342_v8 = vld [vmem:[%s484_s1 + $0x18] sm:$0xff]  ;;  %v341_v10 = vld [vmem:[%s484_s1 + $0x10] sm:$0xff] }
   0x4   :  { %v351_v7 = vld [vmem:[%s484_s1 + $0x60] sm:$0xff]  ;;  %v350_v9 = vld [vmem:[%s484_s1 + $0x58] sm:$0xff]  ;;  %v349_v11 = vld [vmem:[%s484_s1 + $0x50] sm:$0xff] }
   0x5   :  { %v340_v12 = vld [vmem:[%s484_s1 + $0x8] sm:$0xff]  ;;  %v339_v14 = vld [vmem:[%s484_s1] sm:$0xff]  ;;  %v265_v18 = vld [vmem:[%s485_s0 + $0x10] sm:$0xf] }
   0x6   :  { %179 = vmatpush.bf16.msra.mxu0 %v345_v2  ;;  %367 = vmatpush.bf16.msra.mxu2 %v345_v2  ;;  %v348_v13 = vld [vmem:[%s484_s1 + $0x48] sm:$0xff]  ;;  %v347_v15 = vld [vmem:[%s484_s1 + $0x40] sm:$0xff]  ;;  %v338_v19 = vld [vmem:[%s485_s0 + $0x14] sm:$0xf0] }
   0x7   :  { %198 = vmatpush.bf16.msra.mxu1 %v353_v3  ;;  %375 = vmatpush.bf16.msra.mxu3 %v353_v3  ;;  %v257_v16 = vld [vmem:[%s485_s0] sm:$0xf]  ;;  %v336_v17 = vld [vmem:[%s485_s0 + $0x4] sm:$0xf0]  ;;  %v335_v20 = vld [vmem:[%s485_s0 + $0x4] sm:$0xf]  ;;  %v266_v25 = vor.u32 %v338_v19, %v265_v18 }
   0x8   :  { %v259_v21 = vld [vmem:[%s485_s0 + $0x8] sm:$0xf0]  ;;  %v337_v22 = vld [vmem:[%s485_s0 + $0x14] sm:$0xf]  ;;  %v267_v23 = vld [vmem:[%s485_s0 + $0x18] sm:$0xf0]  ;;  %v258_v24 = vor.u32 %v336_v17, %v257_v16 }
   0x9   :  { %v262_v26 = vor.u32 %v335_v20, %v259_v21  ;;  %v270_v27 = vor.u32 %v337_v22, %v267_v23  ;;  %v382_v31 = vld [vmem:[%s486_s2] ss:$0 sm:$0xff] }
   0xa   :  { %180 = vmatpush.bf16.msra.mxu0 %v344_v4  ;;  %368 = vmatpush.bf16.msra.mxu2 %v344_v4 }
   0xb   :  { %199 = vmatpush.bf16.msra.mxu1 %v352_v5  ;;  %376 = vmatpush.bf16.msra.mxu3 %v352_v5 }
   0xe   :  { %181 = vmatpush.bf16.msra.mxu0 %v343_v6  ;;  %369 = vmatpush.bf16.msra.mxu2 %v343_v6 }
   0xf   :  { %200 = vmatpush.bf16.msra.mxu1 %v351_v7  ;;  %377 = vmatpush.bf16.msra.mxu3 %v351_v7 }
  0x12   :  { %182 = vmatpush.bf16.msra.mxu0 %v342_v8  ;;  %370 = vmatpush.bf16.msra.mxu2 %v342_v8 }
  0x13   :  { %201 = vmatpush.bf16.msra.mxu1 %v350_v9  ;;  %378 = vmatpush.bf16.msra.mxu3 %v350_v9 }
  0x16   :  { %183 = vmatpush.bf16.msra.mxu0 %v341_v10  ;;  %371 = vmatpush.bf16.msra.mxu2 %v341_v10 }
  0x17   :  { %202 = vmatpush.bf16.msra.mxu1 %v349_v11  ;;  %379 = vmatpush.bf16.msra.mxu3 %v349_v11 }
  0x1a   :  { %184 = vmatpush.bf16.msra.mxu0 %v340_v12  ;;  %372 = vmatpush.bf16.msra.mxu2 %v340_v12 }
  0x1b   :  { %203 = vmatpush.bf16.msra.mxu1 %v348_v13  ;;  %380 = vmatpush.bf16.msra.mxu3 %v348_v13 }
  0x1e   :  { %185 = vmatpush.bf16.msra.mxu0 %v339_v14  ;;  %373 = vmatpush.bf16.msra.mxu2 %v339_v14 }
  0x1f   :  { %204 = vmatpush.bf16.msra.mxu1 %v347_v15  ;;  %381 = vmatpush.bf16.msra.mxu3 %v347_v15 }
  0x21   :  { %186 = vmatmul.bf16.vlgmr.msra.gmra.mxu0 %v258_v24  ;;  %191 = vmatmul.bf16.vlgmr.msra.gmra.mxu2 %v266_v25 }
  0x22   :  { %205 = vmatmul.bf16.vlgmr.msra.gmra.mxu1 %v262_v26  ;;  %210 = vmatmul.bf16.vlgmr.msra.gmra.mxu3 %v270_v27 }
  0x9e   :  { %v187_v28 = vpop.f32.mrf.mxu0 }
  0x9f   :  { %v206_v29 = vpop.f32.mrf.mxu1 }
  0xa0   :  { %v207_v30 = vadd.f32 %v206_v29, %v187_v28 }
  0xa2   :  { %v235_v36 = vadd.f32 %v382_v31, %v207_v30 }
  0xa4   :  { %v192_v32 = vpop.f32.mrf.mxu2  ;;  %v239_v40 = vmax.f32 %v235_v36, 0.0 }
  0xa5   :  { %v211_v33 = vpop.f32.mrf.mxu3 }
  0xa6   :  { %v189_v34 = vpop.f32.mrf.mxu0  ;;  %v212_v38 = vadd.f32 %v211_v33, %v192_v32 }
  0xa7   :  { %v208_v35 = vpop.f32.mrf.mxu1 }
  0xa8   :  { %v209_v37 = vadd.f32 %v208_v35, %v189_v34  ;;  %v237_v44 = vadd.f32 %v382_v31, %v212_v38 }
  0xaa   :  { %v236_v39 = vadd.f32 %v382_v31, %v209_v37  ;;  %v241_v48 = vmax.f32 %v237_v44, 0.0 }
  0xac   :  { %v240_v41 = vmax.f32 %v236_v39, 0.0  ;;  %v194_v42 = vpop.f32.mrf.mxu2 }
  0xad   :  { %v213_v43 = vpop.f32.mrf.mxu3 }
  0xae   :  { %v358_v45 = vpack.c.bf16 %v240_v41, %v239_v40  ;;  %v214_v46 = vadd.f32 %v213_v43, %v194_v42 }
  0xb0   :  { %359 = vst [vmem:[%s487_s3] sm:$0xff] %v358_v45   ;;  %v238_v47 = vadd.f32 %v382_v31, %v214_v46 }
  0xb2   :  { %v242_v49 = vmax.f32 %v238_v47, 0.0 }
  0xb4   :  { %v363_v50 = vpack.c.bf16 %v242_v49, %v241_v48 }
  0xb6   :  { %365 = vst [vmem:[%s487_s3 + $0x8] sm:$0xff] %v363_v50  }

// kernel: conv_vae_forward.11
= control target key start
LH: loop header
LB: loop body
LE: loop exit
PB: predicated region body
PF: predicated region fallthrough
CT: control target
= control target key end

     0   :  { %s656_s1 = inlined_call_operand.vmem [shape: bf16[128,128], index: 1, kind: input, shape index: {}]   ;;  %s657_s2 = inlined_call_operand.vmem [shape: f32[1,128], index: 2, kind: input, shape index: {}]   ;;  %s658_s0 = inlined_call_operand.vmem [shape: bf16[128,128], index: 0, kind: input, shape index: {}]   ;;  %s659_s3 = inlined_call_operand.vmem [shape: f32[128,128], index: 3, kind: output, shape index: {}]  }
   0x1   :  { %v461_v0 = vld [vmem:[%s656_s1 + $0x38] sm:$0xff]  ;;  %v460_v1 = vld [vmem:[%s656_s1 + $0x30] sm:$0xff]  ;;  %v459_v2 = vld [vmem:[%s656_s1 + $0x28] sm:$0xff] }
   0x2   :  { %178 = vmatpush.bf16.msra.mxu0 %v461_v0  ;;  %462 = vmatpush.bf16.msra.mxu1 %v461_v0  ;;  %v458_v3 = vld [vmem:[%s656_s1 + $0x20] sm:$0xff]  ;;  %v457_v4 = vld [vmem:[%s656_s1 + $0x18] sm:$0xff]  ;;  %v456_v5 = vld [vmem:[%s656_s1 + $0x10] sm:$0xff] }
   0x3   :  { %463 = vmatpush.bf16.msra.mxu2 %v461_v0  ;;  %464 = vmatpush.bf16.msra.mxu3 %v461_v0  ;;  %v455_v6 = vld [vmem:[%s656_s1 + $0x8] sm:$0xff]  ;;  %v454_v7 = vld [vmem:[%s656_s1] sm:$0xff]  ;;  %v448_v9 = vld [vmem:[%s658_s0 + $0x10] sm:$0xff] }
   0x4   :  { %v446_v8 = vld [vmem:[%s658_s0] sm:$0xff]  ;;  %v452_v11 = vld [vmem:[%s658_s0 + $0x30] sm:$0xff]  ;;  %v447_v12 = vld [vmem:[%s658_s0 + $0x8] sm:$0xff] }
   0x5   :  { %v450_v10 = vld [vmem:[%s658_s0 + $0x20] sm:$0xff]  ;;  %v449_v13 = vld [vmem:[%s658_s0 + $0x18] sm:$0xff]  ;;  %v451_v14 = vld [vmem:[%s658_s0 + $0x28] sm:$0xff] }
   0x6   :  { %179 = vmatpush.bf16.msra.mxu0 %v460_v1  ;;  %465 = vmatpush.bf16.msra.mxu1 %v460_v1  ;;  %v453_v15 = vld [vmem:[%s658_s0 + $0x38] sm:$0xff]  ;;  %v590_v16 = vld [vmem:[%s657_s2] ss:$0 sm:$0xff] }
   0x7   :  { %466 = vmatpush.bf16.msra.mxu2 %v460_v1  ;;  %467 = vmatpush.bf16.msra.mxu3 %v460_v1 }
   0xa   :  { %180 = vmatpush.bf16.msra.mxu0 %v459_v2  ;;  %468 = vmatpush.bf16.msra.mxu1 %v459_v2 }
   0xb   :  { %469 = vmatpush.bf16.msra.mxu2 %v459_v2  ;;  %470 = vmatpush.bf16.msra.mxu3 %v459_v2 }
   0xe   :  { %181 = vmatpush.bf16.msra.mxu0 %v458_v3  ;;  %471 = vmatpush.bf16.msra.mxu1 %v458_v3 }
   0xf   :  { %472 = vmatpush.bf16.msra.mxu2 %v458_v3  ;;  %473 = vmatpush.bf16.msra.mxu3 %v458_v3 }
  0x12   :  { %182 = vmatpush.bf16.msra.mxu0 %v457_v4  ;;  %474 = vmatpush.bf16.msra.mxu1 %v457_v4 }
  0x13   :  { %475 = vmatpush.bf16.msra.mxu2 %v457_v4  ;;  %476 = vmatpush.bf16.msra.mxu3 %v457_v4 }
  0x16   :  { %183 = vmatpush.bf16.msra.mxu0 %v456_v5  ;;  %477 = vmatpush.bf16.msra.mxu1 %v456_v5 }
  0x17   :  { %478 = vmatpush.bf16.msra.mxu2 %v456_v5  ;;  %479 = vmatpush.bf16.msra.mxu3 %v456_v5 }
  0x1a   :  { %184 = vmatpush.bf16.msra.mxu0 %v455_v6  ;;  %480 = vmatpush.bf16.msra.mxu1 %v455_v6 }
  0x1b   :  { %481 = vmatpush.bf16.msra.mxu2 %v455_v6  ;;  %482 = vmatpush.bf16.msra.mxu3 %v455_v6 }
  0x1e   :  { %185 = vmatpush.bf16.msra.mxu0 %v454_v7  ;;  %483 = vmatpush.bf16.msra.mxu1 %v454_v7 }
  0x1f   :  { %484 = vmatpush.bf16.msra.mxu2 %v454_v7  ;;  %485 = vmatpush.bf16.msra.mxu3 %v454_v7 }
  0x21   :  { %186 = vmatmul.bf16.vlgmr.msra.gmra.mxu0 %v446_v8  ;;  %196 = vmatmul.bf16.vlgmr.msra.gmra.mxu1 %v448_v9 }
  0x22   :  { %206 = vmatmul.bf16.vlgmr.msra.gmra.mxu2 %v450_v10  ;;  %216 = vmatmul.bf16.vlgmr.msra.gmra.mxu3 %v452_v11 }
  0x31   :  { %191 = vmatmul.bf16.gmra.mxu0 %v447_v12  ;;  %201 = vmatmul.bf16.gmra.mxu1 %v449_v13 }
  0x32   :  { %211 = vmatmul.bf16.gmra.mxu2 %v451_v14  ;;  %221 = vmatmul.bf16.gmra.mxu3 %v453_v15 }
  0x9e   :  { %v187_v17 = vpop.f32.mrf.mxu0  ;;  %v197_v18 = vpop.f32.mrf.mxu1 }
  0x9f   :  { %v282_v19 = vadd.f32 %v590_v16, %v187_v17  ;;  %v286_v20 = vadd.f32 %v590_v16, %v197_v18 }
  0xa1   :  { %v298_v21 = vmul.f32 0.5, %v282_v19  ;;  %v302_v22 = vmul.f32 0.5, %v286_v20 }
  0xa3   :  { %487 = vtanh.f32 %v298_v21 }
  0xa4   :  { %489 = vtanh.f32 %v302_v22 }
  0xa5   :  { %v207_v23 = vpop.f32.mrf.mxu2  ;;  %v217_v24 = vpop.f32.mrf.mxu3 }
  0xa6   :  { %v290_v25 = vadd.f32 %v590_v16, %v207_v23  ;;  %v294_v26 = vadd.f32 %v590_v16, %v217_v24  ;;  %v189_v27 = vpop.f32.mrf.mxu0  ;;  %v199_v28 = vpop.f32.mrf.mxu1 }
  0xa7   :  { %v283_v29 = vadd.f32 %v590_v16, %v189_v27  ;;  %v287_v30 = vadd.f32 %v590_v16, %v199_v28 }
  0xa8   :  { %v306_v31 = vmul.f32 0.5, %v290_v25  ;;  %v310_v32 = vmul.f32 0.5, %v294_v26 }
  0xa9   :  { %v488_v33 = vpop.eup %487  ;;  %v299_v34 = vmul.f32 0.5, %v283_v29  ;;  %v303_v35 = vmul.f32 0.5, %v287_v30 }
  0xaa   :  { %v490_v36 = vpop.eup %489  ;;  %v330_v37 = vadd.f32 1.0, %v488_v33  ;;  %491 = vtanh.f32 %v306_v31 }
  0xab   :  { %v334_v38 = vadd.f32 1.0, %v490_v36  ;;  %493 = vtanh.f32 %v310_v32 }
  0xac   :  { %v346_v39 = vmul.f32 0.5, %v330_v37  ;;  %495 = vtanh.f32 %v299_v34 }
  0xad   :  { %v350_v40 = vmul.f32 0.5, %v334_v38  ;;  %497 = vtanh.f32 %v303_v35  ;;  %v209_v41 = vpop.f32.mrf.mxu2  ;;  %v219_v42 = vpop.f32.mrf.mxu3 }
  0xae   :  { %362 = vst [vmem:[%s659_s3] sm:$0xff] %v346_v39  ;;  %v291_v43 = vadd.f32 %v590_v16, %v209_v41  ;;  %v295_v44 = vadd.f32 %v590_v16, %v219_v42  ;;  %v192_v45 = vpop.f32.mrf.mxu0  ;;  %v202_v46 = vpop.f32.mrf.mxu1 }
  0xaf   :  { %366 = vst [vmem:[%s659_s3 + $0x20] sm:$0xff] %v350_v40  ;;  %v284_v47 = vadd.f32 %v590_v16, %v192_v45  ;;  %v288_v48 = vadd.f32 %v590_v16, %v202_v46 }
  0xb0   :  { %v492_v49 = vpop.eup %491  ;;  %v307_v50 = vmul.f32 0.5, %v291_v43  ;;  %v311_v51 = vmul.f32 0.5, %v295_v44 }
  0xb1   :  { %v494_v52 = vpop.eup %493  ;;  %v338_v53 = vadd.f32 1.0, %v492_v49  ;;  %v300_v54 = vmul.f32 0.5, %v284_v47  ;;  %v304_v55 = vmul.f32 0.5, %v288_v48 }
  0xb2   :  { %v496_v56 = vpop.eup %495  ;;  %v342_v57 = vadd.f32 1.0, %v494_v52  ;;  %499 = vtanh.f32 %v307_v50 }
  0xb3   :  { %v498_v58 = vpop.eup %497  ;;  %v354_v59 = vmul.f32 0.5, %v338_v53  ;;  %v331_v60 = vadd.f32 1.0, %v496_v56  ;;  %501 = vtanh.f32 %v311_v51 }
  0xb4   :  { %v358_v61 = vmul.f32 0.5, %v342_v57  ;;  %v335_v62 = vadd.f32 1.0, %v498_v58  ;;  %503 = vtanh.f32 %v300_v54 }
  0xb5   :  { %370 = vst [vmem:[%s659_s3 + $0x40] sm:$0xff] %v354_v59  ;;  %v347_v63 = vmul.f32 0.5, %v331_v60  ;;  %505 = vtanh.f32 %v304_v55  ;;  %v212_v0 = vpop.f32.mrf.mxu2  ;;  %v222_v1 = vpop.f32.mrf.mxu3 }
  0xb6   :  { %374 = vst [vmem:[%s659_s3 + $0x60] sm:$0xff] %v358_v61  ;;  %v351_v2 = vmul.f32 0.5, %v335_v62  ;;  %v292_v3 = vadd.f32 %v590_v16, %v212_v0  ;;  %v296_v4 = vadd.f32 %v590_v16, %v222_v1  ;;  %v194_v5 = vpop.f32.mrf.mxu0  ;;  %v204_v6 = vpop.f32.mrf.mxu1 }
  0xb7   :  { %363 = vst [vmem:[%s659_s3 + $0x8] sm:$0xff] %v347_v63  ;;  %v285_v7 = vadd.f32 %v590_v16, %v194_v5  ;;  %v289_v8 = vadd.f32 %v590_v16, %v204_v6 }
  0xb8   :  { %v500_v9 = vpop.eup %499  ;;  %367 = vst [vmem:[%s659_s3 + $0x28] sm:$0xff] %v351_v2  ;;  %v308_v10 = vmul.f32 0.5, %v292_v3  ;;  %v312_v11 = vmul.f32 0.5, %v296_v4 }
  0xb9   :  { %v502_v12 = vpop.eup %501  ;;  %v339_v13 = vadd.f32 1.0, %v500_v9  ;;  %v301_v14 = vmul.f32 0.5, %v285_v7  ;;  %v305_v15 = vmul.f32 0.5, %v289_v8 }
  0xba   :  { %v504_v17 = vpop.eup %503  ;;  %v343_v18 = vadd.f32 1.0, %v502_v12  ;;  %507 = vtanh.f32 %v308_v10 }
  0xbb   :  { %v506_v19 = vpop.eup %505  ;;  %v355_v20 = vmul.f32 0.5, %v339_v13  ;;  %v332_v21 = vadd.f32 1.0, %v504_v17  ;;  %509 = vtanh.f32 %v312_v11 }
  0xbc   :  { %v359_v22 = vmul.f32 0.5, %v343_v18  ;;  %v336_v23 = vadd.f32 1.0, %v506_v19  ;;  %511 = vtanh.f32 %v301_v14 }
  0xbd   :  { %371 = vst [vmem:[%s659_s3 + $0x48] sm:$0xff] %v355_v20  ;;  %v348_v24 = vmul.f32 0.5, %v332_v21  ;;  %513 = vtanh.f32 %v305_v15  ;;  %v214_v25 = vpop.f32.mrf.mxu2  ;;  %v224_v26 = vpop.f32.mrf.mxu3 }
  0xbe   :  { %375 = vst [vmem:[%s659_s3 + $0x68] sm:$0xff] %v359_v22  ;;  %v352_v27 = vmul.f32 0.5, %v336_v23  ;;  %v293_v28 = vadd.f32 %v590_v16, %v214_v25  ;;  %v297_v29 = vadd.f32 %v590_v16, %v224_v26 }
  0xbf   :  { %364 = vst [vmem:[%s659_s3 + $0x10] sm:$0xff] %v348_v24 }
  0xc0   :  { %v508_v30 = vpop.eup %507  ;;  %368 = vst [vmem:[%s659_s3 + $0x30] sm:$0xff] %v352_v27  ;;  %v309_v31 = vmul.f32 0.5, %v293_v28  ;;  %v313_v32 = vmul.f32 0.5, %v297_v29 }
  0xc1   :  { %v510_v33 = vpop.eup %509  ;;  %v340_v34 = vadd.f32 1.0, %v508_v30 }
  0xc2   :  { %v512_v35 = vpop.eup %511  ;;  %v344_v36 = vadd.f32 1.0, %v510_v33  ;;  %515 = vtanh.f32 %v309_v31 }
  0xc3   :  { %v514_v37 = vpop.eup %513  ;;  %v356_v38 = vmul.f32 0.5, %v340_v34  ;;  %v333_v39 = vadd.f32 1.0, %v512_v35  ;;  %517 = vtanh.f32 %v313_v32 }
  0xc4   :  { %v360_v16 = vmul.f32 0.5, %v344_v36  ;;  %v337_v40 = vadd.f32 1.0, %v514_v37 }
  0xc5   :  { %372 = vst [vmem:[%s659_s3 + $0x50] sm:$0xff] %v356_v38  ;;  %v349_v41 = vmul.f32 0.5, %v333_v39 }
  0xc6   :  { %376 = vst [vmem:[%s659_s3 + $0x70] sm:$0xff] %v360_v16  ;;  %v353_v42 = vmul.f32 0.5, %v337_v40 }
  0xc7   :  { %365 = vst [vmem:[%s659_s3 + $0x18] sm:$0xff] %v349_v41 }
  0xc8   :  { %v516_v43 = vpop.eup %515  ;;  %369 = vst [vmem:[%s659_s3 + $0x38] sm:$0xff] %v353_v42 }
  0xc9   :  { %v518_v44 = vpop.eup %517  ;;  %v341_v45 = vadd.f32 1.0, %v516_v43 }
  0xca   :  { %v345_v46 = vadd.f32 1.0, %v518_v44 }
  0xcb   :  { %v357_v47 = vmul.f32 0.5, %v341_v45 }
  0xcc   :  { %v361_v48 = vmul.f32 0.5, %v345_v46 }
  0xcd   :  { %373 = vst [vmem:[%s659_s3 + $0x58] sm:$0xff] %v357_v47 }
  0xce   :  { %377 = vst [vmem:[%s659_s3 + $0x78] sm:$0xff] %v361_v48 }

</bundles_post_ra>
